<compile_context>
chip_gen: v5e
topology: v5e:2x2
jax: 0.10.0
libtpu: 0.0.40
codegen_flags: <defaults>
</compile_context>

<pallas_src>
import functools

import jax
import jax.numpy as jnp
import numpy as np
from jax import lax
from jax.experimental import pallas as pl
from jax.experimental.pallas import tpu as pltpu


# ----------------------------- Pallas kernel -------------------------------

def gru_mlp_kernel(x_ref,        # (T*Bp, D) f32  time-major, flattened + batch-padded on host
                   wih_ref,      # (D, 3H)   f32  input->gates weights (transposed)
                   whh_ref,      # (H, 3H)   bf16 hidden->gates weights (transposed)
                   gib_ref,      # (1, 3H)   f32  folded bias: b_ih + [b_hh_r | b_hh_z | 0]
                   bhn_ref,      # (1, H)    f32  n-gate hidden bias (stays inside r*(...))
                   w1_ref,       # (H, 32)   f32
                   b1_ref,       # (1, 32)   f32
                   w2_ref,       # (1, 32)   f32  second Linear as a row (VPU dot)
                   b2_ref,       # (1, 1)    f32
                   out_ref,      # (Bp, 1)   f32
                   *, T, Bp):
    H = whh_ref.shape[0]

    # ---- hoisted input projection: ONE batched matmul for all timesteps ----
    # Kept f32 (off the critical path, D is tiny); result lives in registers,
    # no VMEM scratch round-trip.
    gi_flat = jnp.dot(x_ref[...], wih_ref[...],
                      preferred_element_type=jnp.float32) + gib_ref[...]   # (T*Bp, 3H)

    whh = whh_ref[...]                                                     # bf16, load once
    # Hoist the broadcast of the n-gate hidden bias out of the loop
    # (JAX does not CSE broadcast_in_dim inside loops).
    bhn = jnp.broadcast_to(bhn_ref[...], (Bp, H))                          # (Bp, H)

    # ---- recurrence: only h @ W_hh + gate math remains on the serial path ----
    # Fully unrolled Python loop: T is small & static, all slices below are static,
    # the carry h stays in registers, and the LLO scheduler sees across steps.
    h = jnp.zeros((Bp, H), jnp.float32)                 # matches torch.zeros h0
    for t in range(T):
        gi = gi_flat[t * Bp:(t + 1) * Bp, :]            # (Bp, 3H) static slice
        gh = jnp.dot(h.astype(jnp.bfloat16), whh,
                     preferred_element_type=jnp.float32)   # single bf16 MXU pass
        rz = jax.nn.sigmoid(gi[:, :2 * H] + gh[:, :2 * H])  # fused r|z: one EUP push
        r = rz[:, :H]
        z = rz[:, H:]
        n = jnp.tanh(gi[:, 2 * H:] + r * (gh[:, 2 * H:] + bhn))
        h = n + z * (h - n)                             # == (1-z)*n + z*h_prev

    # ---- MLP head: Linear(H,32) -> ReLU -> row-dot (VPU+XLU) -> Sigmoid ----
    m = jnp.dot(h, w1_ref[...],
                preferred_element_type=jnp.float32) + b1_ref[...]          # (Bp, 32)
    m = jnp.maximum(m, 0.0)
    o = jnp.sum(m * w2_ref[...], axis=-1, keepdims=True) + b2_ref[...]     # (Bp, 1)
    out_ref[...] = jax.nn.sigmoid(o)


# ------------------------------ wrapper -------------------------------------

@jax.jit
def rnn_family_forward(x_btd, params):
    """x_btd: (B, T, D) batch-first like the PyTorch module. Returns (B, 1)."""
    B, T, D = x_btd.shape
    H = params["whh_t"].shape[0]
    Bp = ((B + 7) // 8) * 8                         # pad batch to f32 sublane multiple

    # Time-major, padded, flattened on the host (free layout plumbing).
    x_tbd = jnp.transpose(x_btd, (1, 0, 2))
    x_flat = jnp.pad(x_tbd, ((0, 0), (0, Bp - B), (0, 0))).reshape(T * Bp, D)

    # Fold biases: r/z hidden biases join the input-projection bias; only the
    # n-gate hidden bias (multiplied by r) stays in the loop.
    bih, bhh = params["bih"], params["bhh"]         # (1, 3H) each
    gi_bias = bih.at[:, :2 * H].add(bhh[:, :2 * H])
    bhn = bhh[:, 2 * H:]                            # (1, H)

    # Only the recurrent weights are cast to bf16 (MXU operands); gate math stays f32.
    whh_bf16 = params["whh_t"].astype(jnp.bfloat16)

    vmem = pl.BlockSpec(memory_space=pltpu.MemorySpace.VMEM)

    flops = (2 * T * Bp * D * 3 * H        # hoisted input projection
             + 2 * T * Bp * H * 3 * H      # recurrent h @ W_hh
             + 2 * Bp * H * 32 + 2 * Bp * 32)
    transcendentals = 3 * T * Bp * H + Bp
    bytes_accessed = (4 * (T * Bp * D + D * 3 * H + 4 * H
                           + H * 32 + 32 + 32 + 1 + Bp)
                      + 2 * (H * 3 * H))   # bf16 W_hh

    out = pl.pallas_call(
        functools.partial(gru_mlp_kernel, T=T, Bp=Bp),
        out_shape=jax.ShapeDtypeStruct((Bp, 1), jnp.float32),
        in_specs=[vmem] * 9,
        out_specs=vmem,
        compiler_params=pltpu.CompilerParams(vmem_limit_bytes=32 * 1024 * 1024),
        cost_estimate=pl.CostEstimate(flops=flops,
                                      transcendentals=transcendentals,
                                      bytes_accessed=bytes_accessed),
    )(
        x_flat,
        params["wih_t"], whh_bf16, gi_bias, bhn,
        params["w1_t"], params["b1"], params["w2_row"], params["b2"],
    )
    return out[:B]


# ------------------------- deterministic params ------------------------------

def init_params(key, dim_in, dim_hidden):
    H = dim_hidden
    ks = jax.random.split(key, 8)
    s_rnn = 1.0 / np.sqrt(H)

    def u(k, shape, scale):
        return jax.random.uniform(k, shape, jnp.float32, -scale, scale)

    # PyTorch GRU parameter shapes: weight_ih (3H, D), weight_hh (3H, H), biases (3H,)
    w_ih = u(ks[0], (3 * H, dim_in), s_rnn)
    w_hh = u(ks[1], (3 * H, H), s_rnn)
    b_ih = u(ks[2], (3 * H,), s_rnn)
    b_hh = u(ks[3], (3 * H,), s_rnn)

    # MLP: Linear(H, 32), Linear(32, 1)
    s1 = 1.0 / np.sqrt(H)
    s2 = 1.0 / np.sqrt(32)
    w1 = u(ks[4], (32, H), s1)
    b1 = u(ks[5], (32,), s1)
    w2 = u(ks[6], (1, 32), s2)
    b2 = u(ks[7], (1,), s2)

    return {
        "wih_t": w_ih.T,                 # (D, 3H)
        "whh_t": w_hh.T,                 # (H, 3H)
        "bih": b_ih.reshape(1, 3 * H),
        "bhh": b_hh.reshape(1, 3 * H),
        "w1_t": w1.T,                    # (H, 32)
        "b1": b1.reshape(1, 32),
        "w2_row": w2.reshape(1, 32),     # (1, 32) row for VPU dot
        "b2": b2.reshape(1, 1),
    }


# --------------------------- pure-JAX reference ------------------------------

def reference_forward(x_btd, params):
    B, T, D = x_btd.shape
    H = params["whh_t"].shape[0]
    wih_t, whh_t = params["wih_t"], params["whh_t"]
    bih, bhh = params["bih"][0], params["bhh"][0]

    def step(h, x_t):
        gi = x_t @ wih_t + bih
        gh = h @ whh_t + bhh
        i_r, i_z, i_n = gi[:, :H], gi[:, H:2 * H], gi[:, 2 * H:]
        h_r, h_z, h_n = gh[:, :H], gh[:, H:2 * H], gh[:, 2 * H:]
        r = jax.nn.sigmoid(i_r + h_r)
        z = jax.nn.sigmoid(i_z + h_z)
        n = jnp.tanh(i_n + r * h_n)
        h_new = (1.0 - z) * n + z * h
        return h_new, None

    h0 = jnp.zeros((B, H), jnp.float32)
    x_tbd = jnp.transpose(x_btd, (1, 0, 2))
    h_last, _ = lax.scan(step, h0, x_tbd)
    m = jnp.maximum(h_last @ params["w1_t"] + params["b1"], 0.0)
    o = m @ params["w2_row"].T + params["b2"]
    return jax.nn.sigmoid(o)


# ---------------------------------- main -------------------------------------

if __name__ == "__main__":
    B, T, D, H = 2, 8, 4, 128   # batch, seq_len, dim_in, dim_hidden

    key = jax.random.PRNGKey(0)
    k_x, k_p = jax.random.split(key)
    x = jax.random.normal(k_x, (B, T, D), jnp.float32)
    params = init_params(k_p, D, H)

    out = rnn_family_forward(x, params)
    out = jax.block_until_ready(out)

    ref = reference_forward(x, params)
    # Tolerance loosened slightly vs. the pure-f32 version: the recurrent matmul
    # now uses bf16 operands (f32 accumulation) over an H=128 contraction x T steps.
    np.testing.assert_allclose(np.asarray(out), np.asarray(ref), rtol=1e-2, atol=1e-2)
    assert out.shape == (B, 1)

    print("KERNEL_OK")
</pallas_src>

<mosaic_0001>
module attributes {stable_mosaic.version = 11 : i64} {
  func.func @gru_mlp_kernel(%arg0: memref<64x4xf32, #tpu.memory_space<vmem>>, %arg1: memref<4x384xf32, #tpu.memory_space<vmem>>, %arg2: memref<128x384xbf16, #tpu.memory_space<vmem>>, %arg3: memref<1x384xf32, #tpu.memory_space<vmem>>, %arg4: memref<1x128xf32, #tpu.memory_space<vmem>>, %arg5: memref<128x32xf32, #tpu.memory_space<vmem>>, %arg6: memref<1x32xf32, #tpu.memory_space<vmem>>, %arg7: memref<1x32xf32, #tpu.memory_space<vmem>>, %arg8: memref<1x1xf32, #tpu.memory_space<vmem>>, %arg9: memref<8x1xf32, #tpu.memory_space<vmem>>) attributes {dimension_semantics = [], scalar_prefetch = 0 : i64, scratch_operands = 0 : i64, tpu.core_type = #tpu.core_type<tc>} {
    %c0 = arith.constant 0 : index
    %c0_0 = arith.constant 0 : index
    %0 = vector.load %arg0[%c0, %c0_0] : memref<64x4xf32, #tpu.memory_space<vmem>>, vector<64x4xf32>
    %c0_1 = arith.constant 0 : index
    %c0_2 = arith.constant 0 : index
    %1 = vector.load %arg1[%c0_1, %c0_2] : memref<4x384xf32, #tpu.memory_space<vmem>>, vector<4x384xf32>
    %cst = arith.constant dense<0.000000e+00> : vector<64x384xf32>
    %2 = tpu.matmul %0, %1, %cst {dimension_numbers = #tpu.dot_dimension_numbers<[1], [0], [0], [1], [0, 0, 1, 1], [], []>} : vector<64x4xf32>, vector<4x384xf32>, vector<64x384xf32> -> vector<64x384xf32>
    %c0_3 = arith.constant 0 : index
    %c0_4 = arith.constant 0 : index
    %3 = vector.load %arg3[%c0_3, %c0_4] : memref<1x384xf32, #tpu.memory_space<vmem>>, vector<1x384xf32>
    %4 = vector.broadcast %3 : vector<1x384xf32> to vector<64x384xf32>
    %5 = arith.addf %2, %4 : vector<64x384xf32>
    %c0_5 = arith.constant 0 : index
    %c0_6 = arith.constant 0 : index
    %6 = vector.load %arg2[%c0_5, %c0_6] : memref<128x384xbf16, #tpu.memory_space<vmem>>, vector<128x384xbf16>
    %c0_7 = arith.constant 0 : index
    %c0_8 = arith.constant 0 : index
    %7 = vector.load %arg4[%c0_7, %c0_8] : memref<1x128xf32, #tpu.memory_space<vmem>>, vector<1x128xf32>
    %8 = vector.shape_cast %7 : vector<1x128xf32> to vector<1x128xf32>
    %9 = vector.broadcast %8 : vector<1x128xf32> to vector<8x128xf32>
    %cst_9 = arith.constant 0.000000e+00 : f32
    %10 = vector.broadcast %cst_9 : f32 to vector<8x128xf32>
    %11 = vector.extract_strided_slice %5 {offsets = [0, 0], sizes = [8, 384], strides = [1, 1]} : vector<64x384xf32> to vector<8x384xf32>
    %12 = arith.truncf %10 : vector<8x128xf32> to vector<8x128xbf16>
    %cst_10 = arith.constant dense<0.000000e+00> : vector<8x384xf32>
    %13 = tpu.matmul %12, %6, %cst_10 {dimension_numbers = #tpu.dot_dimension_numbers<[1], [0], [0], [1], [0, 0, 1, 1], [], []>} : vector<8x128xbf16>, vector<128x384xbf16>, vector<8x384xf32> -> vector<8x384xf32>
    %14 = vector.extract_strided_slice %11 {offsets = [0, 0], sizes = [8, 256], strides = [1, 1]} : vector<8x384xf32> to vector<8x256xf32>
    %15 = vector.extract_strided_slice %13 {offsets = [0, 0], sizes = [8, 256], strides = [1, 1]} : vector<8x384xf32> to vector<8x256xf32>
    %16 = arith.addf %14, %15 : vector<8x256xf32>
    %17 = arith.negf %16 : vector<8x256xf32>
    %18 = math.exp %17 : vector<8x256xf32>
    %cst_11 = arith.constant 1.000000e+00 : f32
    %19 = vector.broadcast %cst_11 : f32 to vector<8x256xf32>
    %20 = arith.addf %19, %18 : vector<8x256xf32>
    %21 = arith.divf %19, %20 : vector<8x256xf32>
    %22 = vector.extract_strided_slice %21 {offsets = [0, 0], sizes = [8, 128], strides = [1, 1]} : vector<8x256xf32> to vector<8x128xf32>
    %23 = vector.extract_strided_slice %21 {offsets = [0, 128], sizes = [8, 128], strides = [1, 1]} : vector<8x256xf32> to vector<8x128xf32>
    %24 = vector.extract_strided_slice %11 {offsets = [0, 256], sizes = [8, 128], strides = [1, 1]} : vector<8x384xf32> to vector<8x128xf32>
    %25 = vector.extract_strided_slice %13 {offsets = [0, 256], sizes = [8, 128], strides = [1, 1]} : vector<8x384xf32> to vector<8x128xf32>
    %26 = arith.addf %25, %9 : vector<8x128xf32>
    %27 = arith.mulf %22, %26 : vector<8x128xf32>
    %28 = arith.addf %24, %27 : vector<8x128xf32>
    %29 = math.tanh %28 : vector<8x128xf32>
    %30 = arith.subf %10, %29 : vector<8x128xf32>
    %31 = arith.mulf %23, %30 : vector<8x128xf32>
    %32 = arith.addf %29, %31 : vector<8x128xf32>
    %33 = vector.extract_strided_slice %5 {offsets = [8, 0], sizes = [8, 384], strides = [1, 1]} : vector<64x384xf32> to vector<8x384xf32>
    %34 = arith.truncf %32 : vector<8x128xf32> to vector<8x128xbf16>
    %cst_12 = arith.constant dense<0.000000e+00> : vector<8x384xf32>
    %35 = tpu.matmul %34, %6, %cst_12 {dimension_numbers = #tpu.dot_dimension_numbers<[1], [0], [0], [1], [0, 0, 1, 1], [], []>} : vector<8x128xbf16>, vector<128x384xbf16>, vector<8x384xf32> -> vector<8x384xf32>
    %36 = vector.extract_strided_slice %33 {offsets = [0, 0], sizes = [8, 256], strides = [1, 1]} : vector<8x384xf32> to vector<8x256xf32>
    %37 = vector.extract_strided_slice %35 {offsets = [0, 0], sizes = [8, 256], strides = [1, 1]} : vector<8x384xf32> to vector<8x256xf32>
    %38 = arith.addf %36, %37 : vector<8x256xf32>
    %39 = arith.negf %38 : vector<8x256xf32>
    %40 = math.exp %39 : vector<8x256xf32>
    %cst_13 = arith.constant 1.000000e+00 : f32
    %41 = vector.broadcast %cst_13 : f32 to vector<8x256xf32>
    %42 = arith.addf %41, %40 : vector<8x256xf32>
    %43 = arith.divf %41, %42 : vector<8x256xf32>
    %44 = vector.extract_strided_slice %43 {offsets = [0, 0], sizes = [8, 128], strides = [1, 1]} : vector<8x256xf32> to vector<8x128xf32>
    %45 = vector.extract_strided_slice %43 {offsets = [0, 128], sizes = [8, 128], strides = [1, 1]} : vector<8x256xf32> to vector<8x128xf32>
    %46 = vector.extract_strided_slice %33 {offsets = [0, 256], sizes = [8, 128], strides = [1, 1]} : vector<8x384xf32> to vector<8x128xf32>
    %47 = vector.extract_strided_slice %35 {offsets = [0, 256], sizes = [8, 128], strides = [1, 1]} : vector<8x384xf32> to vector<8x128xf32>
    %48 = arith.addf %47, %9 : vector<8x128xf32>
    %49 = arith.mulf %44, %48 : vector<8x128xf32>
    %50 = arith.addf %46, %49 : vector<8x128xf32>
    %51 = math.tanh %50 : vector<8x128xf32>
    %52 = arith.subf %32, %51 : vector<8x128xf32>
    %53 = arith.mulf %45, %52 : vector<8x128xf32>
    %54 = arith.addf %51, %53 : vector<8x128xf32>
    %55 = vector.extract_strided_slice %5 {offsets = [16, 0], sizes = [8, 384], strides = [1, 1]} : vector<64x384xf32> to vector<8x384xf32>
    %56 = arith.truncf %54 : vector<8x128xf32> to vector<8x128xbf16>
    %cst_14 = arith.constant dense<0.000000e+00> : vector<8x384xf32>
    %57 = tpu.matmul %56, %6, %cst_14 {dimension_numbers = #tpu.dot_dimension_numbers<[1], [0], [0], [1], [0, 0, 1, 1], [], []>} : vector<8x128xbf16>, vector<128x384xbf16>, vector<8x384xf32> -> vector<8x384xf32>
    %58 = vector.extract_strided_slice %55 {offsets = [0, 0], sizes = [8, 256], strides = [1, 1]} : vector<8x384xf32> to vector<8x256xf32>
    %59 = vector.extract_strided_slice %57 {offsets = [0, 0], sizes = [8, 256], strides = [1, 1]} : vector<8x384xf32> to vector<8x256xf32>
    %60 = arith.addf %58, %59 : vector<8x256xf32>
    %61 = arith.negf %60 : vector<8x256xf32>
    %62 = math.exp %61 : vector<8x256xf32>
    %cst_15 = arith.constant 1.000000e+00 : f32
    %63 = vector.broadcast %cst_15 : f32 to vector<8x256xf32>
    %64 = arith.addf %63, %62 : vector<8x256xf32>
    %65 = arith.divf %63, %64 : vector<8x256xf32>
    %66 = vector.extract_strided_slice %65 {offsets = [0, 0], sizes = [8, 128], strides = [1, 1]} : vector<8x256xf32> to vector<8x128xf32>
    %67 = vector.extract_strided_slice %65 {offsets = [0, 128], sizes = [8, 128], strides = [1, 1]} : vector<8x256xf32> to vector<8x128xf32>
    %68 = vector.extract_strided_slice %55 {offsets = [0, 256], sizes = [8, 128], strides = [1, 1]} : vector<8x384xf32> to vector<8x128xf32>
    %69 = vector.extract_strided_slice %57 {offsets = [0, 256], sizes = [8, 128], strides = [1, 1]} : vector<8x384xf32> to vector<8x128xf32>
    %70 = arith.addf %69, %9 : vector<8x128xf32>
    %71 = arith.mulf %66, %70 : vector<8x128xf32>
    %72 = arith.addf %68, %71 : vector<8x128xf32>
    %73 = math.tanh %72 : vector<8x128xf32>
    %74 = arith.subf %54, %73 : vector<8x128xf32>
    %75 = arith.mulf %67, %74 : vector<8x128xf32>
    %76 = arith.addf %73, %75 : vector<8x128xf32>
    %77 = vector.extract_strided_slice %5 {offsets = [24, 0], sizes = [8, 384], strides = [1, 1]} : vector<64x384xf32> to vector<8x384xf32>
    %78 = arith.truncf %76 : vector<8x128xf32> to vector<8x128xbf16>
    %cst_16 = arith.constant dense<0.000000e+00> : vector<8x384xf32>
    %79 = tpu.matmul %78, %6, %cst_16 {dimension_numbers = #tpu.dot_dimension_numbers<[1], [0], [0], [1], [0, 0, 1, 1], [], []>} : vector<8x128xbf16>, vector<128x384xbf16>, vector<8x384xf32> -> vector<8x384xf32>
    %80 = vector.extract_strided_slice %77 {offsets = [0, 0], sizes = [8, 256], strides = [1, 1]} : vector<8x384xf32> to vector<8x256xf32>
    %81 = vector.extract_strided_slice %79 {offsets = [0, 0], sizes = [8, 256], strides = [1, 1]} : vector<8x384xf32> to vector<8x256xf32>
    %82 = arith.addf %80, %81 : vector<8x256xf32>
    %83 = arith.negf %82 : vector<8x256xf32>
    %84 = math.exp %83 : vector<8x256xf32>
    %cst_17 = arith.constant 1.000000e+00 : f32
    %85 = vector.broadcast %cst_17 : f32 to vector<8x256xf32>
    %86 = arith.addf %85, %84 : vector<8x256xf32>
    %87 = arith.divf %85, %86 : vector<8x256xf32>
    %88 = vector.extract_strided_slice %87 {offsets = [0, 0], sizes = [8, 128], strides = [1, 1]} : vector<8x256xf32> to vector<8x128xf32>
    %89 = vector.extract_strided_slice %87 {offsets = [0, 128], sizes = [8, 128], strides = [1, 1]} : vector<8x256xf32> to vector<8x128xf32>
    %90 = vector.extract_strided_slice %77 {offsets = [0, 256], sizes = [8, 128], strides = [1, 1]} : vector<8x384xf32> to vector<8x128xf32>
    %91 = vector.extract_strided_slice %79 {offsets = [0, 256], sizes = [8, 128], strides = [1, 1]} : vector<8x384xf32> to vector<8x128xf32>
    %92 = arith.addf %91, %9 : vector<8x128xf32>
    %93 = arith.mulf %88, %92 : vector<8x128xf32>
    %94 = arith.addf %90, %93 : vector<8x128xf32>
    %95 = math.tanh %94 : vector<8x128xf32>
    %96 = arith.subf %76, %95 : vector<8x128xf32>
    %97 = arith.mulf %89, %96 : vector<8x128xf32>
    %98 = arith.addf %95, %97 : vector<8x128xf32>
    %99 = vector.extract_strided_slice %5 {offsets = [32, 0], sizes = [8, 384], strides = [1, 1]} : vector<64x384xf32> to vector<8x384xf32>
    %100 = arith.truncf %98 : vector<8x128xf32> to vector<8x128xbf16>
    %cst_18 = arith.constant dense<0.000000e+00> : vector<8x384xf32>
    %101 = tpu.matmul %100, %6, %cst_18 {dimension_numbers = #tpu.dot_dimension_numbers<[1], [0], [0], [1], [0, 0, 1, 1], [], []>} : vector<8x128xbf16>, vector<128x384xbf16>, vector<8x384xf32> -> vector<8x384xf32>
    %102 = vector.extract_strided_slice %99 {offsets = [0, 0], sizes = [8, 256], strides = [1, 1]} : vector<8x384xf32> to vector<8x256xf32>
    %103 = vector.extract_strided_slice %101 {offsets = [0, 0], sizes = [8, 256], strides = [1, 1]} : vector<8x384xf32> to vector<8x256xf32>
    %104 = arith.addf %102, %103 : vector<8x256xf32>
    %105 = arith.negf %104 : vector<8x256xf32>
    %106 = math.exp %105 : vector<8x256xf32>
    %cst_19 = arith.constant 1.000000e+00 : f32
    %107 = vector.broadcast %cst_19 : f32 to vector<8x256xf32>
    %108 = arith.addf %107, %106 : vector<8x256xf32>
    %109 = arith.divf %107, %108 : vector<8x256xf32>
    %110 = vector.extract_strided_slice %109 {offsets = [0, 0], sizes = [8, 128], strides = [1, 1]} : vector<8x256xf32> to vector<8x128xf32>
    %111 = vector.extract_strided_slice %109 {offsets = [0, 128], sizes = [8, 128], strides = [1, 1]} : vector<8x256xf32> to vector<8x128xf32>
    %112 = vector.extract_strided_slice %99 {offsets = [0, 256], sizes = [8, 128], strides = [1, 1]} : vector<8x384xf32> to vector<8x128xf32>
    %113 = vector.extract_strided_slice %101 {offsets = [0, 256], sizes = [8, 128], strides = [1, 1]} : vector<8x384xf32> to vector<8x128xf32>
    %114 = arith.addf %113, %9 : vector<8x128xf32>
    %115 = arith.mulf %110, %114 : vector<8x128xf32>
    %116 = arith.addf %112, %115 : vector<8x128xf32>
    %117 = math.tanh %116 : vector<8x128xf32>
    %118 = arith.subf %98, %117 : vector<8x128xf32>
    %119 = arith.mulf %111, %118 : vector<8x128xf32>
    %120 = arith.addf %117, %119 : vector<8x128xf32>
    %121 = vector.extract_strided_slice %5 {offsets = [40, 0], sizes = [8, 384], strides = [1, 1]} : vector<64x384xf32> to vector<8x384xf32>
    %122 = arith.truncf %120 : vector<8x128xf32> to vector<8x128xbf16>
    %cst_20 = arith.constant dense<0.000000e+00> : vector<8x384xf32>
    %123 = tpu.matmul %122, %6, %cst_20 {dimension_numbers = #tpu.dot_dimension_numbers<[1], [0], [0], [1], [0, 0, 1, 1], [], []>} : vector<8x128xbf16>, vector<128x384xbf16>, vector<8x384xf32> -> vector<8x384xf32>
    %124 = vector.extract_strided_slice %121 {offsets = [0, 0], sizes = [8, 256], strides = [1, 1]} : vector<8x384xf32> to vector<8x256xf32>
    %125 = vector.extract_strided_slice %123 {offsets = [0, 0], sizes = [8, 256], strides = [1, 1]} : vector<8x384xf32> to vector<8x256xf32>
    %126 = arith.addf %124, %125 : vector<8x256xf32>
    %127 = arith.negf %126 : vector<8x256xf32>
    %128 = math.exp %127 : vector<8x256xf32>
    %cst_21 = arith.constant 1.000000e+00 : f32
    %129 = vector.broadcast %cst_21 : f32 to vector<8x256xf32>
    %130 = arith.addf %129, %128 : vector<8x256xf32>
    %131 = arith.divf %129, %130 : vector<8x256xf32>
    %132 = vector.extract_strided_slice %131 {offsets = [0, 0], sizes = [8, 128], strides = [1, 1]} : vector<8x256xf32> to vector<8x128xf32>
    %133 = vector.extract_strided_slice %131 {offsets = [0, 128], sizes = [8, 128], strides = [1, 1]} : vector<8x256xf32> to vector<8x128xf32>
    %134 = vector.extract_strided_slice %121 {offsets = [0, 256], sizes = [8, 128], strides = [1, 1]} : vector<8x384xf32> to vector<8x128xf32>
    %135 = vector.extract_strided_slice %123 {offsets = [0, 256], sizes = [8, 128], strides = [1, 1]} : vector<8x384xf32> to vector<8x128xf32>
    %136 = arith.addf %135, %9 : vector<8x128xf32>
    %137 = arith.mulf %132, %136 : vector<8x128xf32>
    %138 = arith.addf %134, %137 : vector<8x128xf32>
    %139 = math.tanh %138 : vector<8x128xf32>
    %140 = arith.subf %120, %139 : vector<8x128xf32>
    %141 = arith.mulf %133, %140 : vector<8x128xf32>
    %142 = arith.addf %139, %141 : vector<8x128xf32>
    %143 = vector.extract_strided_slice %5 {offsets = [48, 0], sizes = [8, 384], strides = [1, 1]} : vector<64x384xf32> to vector<8x384xf32>
    %144 = arith.truncf %142 : vector<8x128xf32> to vector<8x128xbf16>
    %cst_22 = arith.constant dense<0.000000e+00> : vector<8x384xf32>
    %145 = tpu.matmul %144, %6, %cst_22 {dimension_numbers = #tpu.dot_dimension_numbers<[1], [0], [0], [1], [0, 0, 1, 1], [], []>} : vector<8x128xbf16>, vector<128x384xbf16>, vector<8x384xf32> -> vector<8x384xf32>
    %146 = vector.extract_strided_slice %143 {offsets = [0, 0], sizes = [8, 256], strides = [1, 1]} : vector<8x384xf32> to vector<8x256xf32>
    %147 = vector.extract_strided_slice %145 {offsets = [0, 0], sizes = [8, 256], strides = [1, 1]} : vector<8x384xf32> to vector<8x256xf32>
    %148 = arith.addf %146, %147 : vector<8x256xf32>
    %149 = arith.negf %148 : vector<8x256xf32>
    %150 = math.exp %149 : vector<8x256xf32>
    %cst_23 = arith.constant 1.000000e+00 : f32
    %151 = vector.broadcast %cst_23 : f32 to vector<8x256xf32>
    %152 = arith.addf %151, %150 : vector<8x256xf32>
    %153 = arith.divf %151, %152 : vector<8x256xf32>
    %154 = vector.extract_strided_slice %153 {offsets = [0, 0], sizes = [8, 128], strides = [1, 1]} : vector<8x256xf32> to vector<8x128xf32>
    %155 = vector.extract_strided_slice %153 {offsets = [0, 128], sizes = [8, 128], strides = [1, 1]} : vector<8x256xf32> to vector<8x128xf32>
    %156 = vector.extract_strided_slice %143 {offsets = [0, 256], sizes = [8, 128], strides = [1, 1]} : vector<8x384xf32> to vector<8x128xf32>
    %157 = vector.extract_strided_slice %145 {offsets = [0, 256], sizes = [8, 128], strides = [1, 1]} : vector<8x384xf32> to vector<8x128xf32>
    %158 = arith.addf %157, %9 : vector<8x128xf32>
    %159 = arith.mulf %154, %158 : vector<8x128xf32>
    %160 = arith.addf %156, %159 : vector<8x128xf32>
    %161 = math.tanh %160 : vector<8x128xf32>
    %162 = arith.subf %142, %161 : vector<8x128xf32>
    %163 = arith.mulf %155, %162 : vector<8x128xf32>
    %164 = arith.addf %161, %163 : vector<8x128xf32>
    %165 = vector.extract_strided_slice %5 {offsets = [56, 0], sizes = [8, 384], strides = [1, 1]} : vector<64x384xf32> to vector<8x384xf32>
    %166 = arith.truncf %164 : vector<8x128xf32> to vector<8x128xbf16>
    %cst_24 = arith.constant dense<0.000000e+00> : vector<8x384xf32>
    %167 = tpu.matmul %166, %6, %cst_24 {dimension_numbers = #tpu.dot_dimension_numbers<[1], [0], [0], [1], [0, 0, 1, 1], [], []>} : vector<8x128xbf16>, vector<128x384xbf16>, vector<8x384xf32> -> vector<8x384xf32>
    %168 = vector.extract_strided_slice %165 {offsets = [0, 0], sizes = [8, 256], strides = [1, 1]} : vector<8x384xf32> to vector<8x256xf32>
    %169 = vector.extract_strided_slice %167 {offsets = [0, 0], sizes = [8, 256], strides = [1, 1]} : vector<8x384xf32> to vector<8x256xf32>
    %170 = arith.addf %168, %169 : vector<8x256xf32>
    %171 = arith.negf %170 : vector<8x256xf32>
    %172 = math.exp %171 : vector<8x256xf32>
    %cst_25 = arith.constant 1.000000e+00 : f32
    %173 = vector.broadcast %cst_25 : f32 to vector<8x256xf32>
    %174 = arith.addf %173, %172 : vector<8x256xf32>
    %175 = arith.divf %173, %174 : vector<8x256xf32>
    %176 = vector.extract_strided_slice %175 {offsets = [0, 0], sizes = [8, 128], strides = [1, 1]} : vector<8x256xf32> to vector<8x128xf32>
    %177 = vector.extract_strided_slice %175 {offsets = [0, 128], sizes = [8, 128], strides = [1, 1]} : vector<8x256xf32> to vector<8x128xf32>
    %178 = vector.extract_strided_slice %165 {offsets = [0, 256], sizes = [8, 128], strides = [1, 1]} : vector<8x384xf32> to vector<8x128xf32>
    %179 = vector.extract_strided_slice %167 {offsets = [0, 256], sizes = [8, 128], strides = [1, 1]} : vector<8x384xf32> to vector<8x128xf32>
    %180 = arith.addf %179, %9 : vector<8x128xf32>
    %181 = arith.mulf %176, %180 : vector<8x128xf32>
    %182 = arith.addf %178, %181 : vector<8x128xf32>
    %183 = math.tanh %182 : vector<8x128xf32>
    %184 = arith.subf %164, %183 : vector<8x128xf32>
    %185 = arith.mulf %177, %184 : vector<8x128xf32>
    %186 = arith.addf %183, %185 : vector<8x128xf32>
    %c0_26 = arith.constant 0 : index
    %c0_27 = arith.constant 0 : index
    %187 = vector.load %arg5[%c0_26, %c0_27] : memref<128x32xf32, #tpu.memory_space<vmem>>, vector<128x32xf32>
    %cst_28 = arith.constant dense<0.000000e+00> : vector<8x32xf32>
    %188 = tpu.matmul %186, %187, %cst_28 {dimension_numbers = #tpu.dot_dimension_numbers<[1], [0], [0], [1], [0, 0, 1, 1], [], []>} : vector<8x128xf32>, vector<128x32xf32>, vector<8x32xf32> -> vector<8x32xf32>
    %c0_29 = arith.constant 0 : index
    %c0_30 = arith.constant 0 : index
    %189 = vector.load %arg6[%c0_29, %c0_30] : memref<1x32xf32, #tpu.memory_space<vmem>>, vector<1x32xf32>
    %190 = vector.broadcast %189 : vector<1x32xf32> to vector<8x32xf32>
    %191 = arith.addf %188, %190 : vector<8x32xf32>
    %cst_31 = arith.constant 0.000000e+00 : f32
    %192 = vector.broadcast %cst_31 : f32 to vector<8x32xf32>
    %193 = arith.maximumf %191, %192 : vector<8x32xf32>
    %c0_32 = arith.constant 0 : index
    %c0_33 = arith.constant 0 : index
    %194 = vector.load %arg7[%c0_32, %c0_33] : memref<1x32xf32, #tpu.memory_space<vmem>>, vector<1x32xf32>
    %195 = vector.broadcast %194 : vector<1x32xf32> to vector<8x32xf32>
    %196 = arith.mulf %193, %195 : vector<8x32xf32>
    %cst_34 = arith.constant dense<0.000000e+00> : vector<8xf32>
    %197 = vector.multi_reduction <add>, %196, %cst_34 [1] : vector<8x32xf32> to vector<8xf32>
    %198 = vector.shape_cast %197 : vector<8xf32> to vector<8x1xf32>
    %c0_35 = arith.constant 0 : index
    %c0_36 = arith.constant 0 : index
    %199 = vector.load %arg8[%c0_35, %c0_36] : memref<1x1xf32, #tpu.memory_space<vmem>>, vector<1x1xf32>
    %200 = vector.broadcast %199 : vector<1x1xf32> to vector<8x1xf32>
    %201 = arith.addf %198, %200 : vector<8x1xf32>
    %202 = arith.negf %201 : vector<8x1xf32>
    %203 = math.exp %202 : vector<8x1xf32>
    %cst_37 = arith.constant 1.000000e+00 : f32
    %204 = vector.broadcast %cst_37 : f32 to vector<8x1xf32>
    %205 = arith.addf %204, %203 : vector<8x1xf32>
    %206 = arith.divf %204, %205 : vector<8x1xf32>
    %c0_38 = arith.constant 0 : index
    %c0_39 = arith.constant 0 : index
    %207 = vector.load %arg9[%c0_38, %c0_39] : memref<8x1xf32, #tpu.memory_space<vmem>>, vector<8x1xf32>
    tpu.vector_store %arg9[%c0_38, %c0_39], %206 {strides = array<i32>} : memref<8x1xf32, #tpu.memory_space<vmem>>, vector<8x1xf32>,
    return
  }
}

</mosaic_0001>

<bundles_post_ra>
// kernel: rnn_family_forward.1
= control target key start
LH: loop header
LB: loop body
LE: loop exit
PB: predicated region body
PF: predicated region fallthrough
CT: control target
= control target key end

     0   :  { %vm86_vm0 = vcmask 1043456   ;;  %vm61_vm1 = vcmask 31744   ;;  %v1409_v59 = vmov 0   ;;  %s2114_s2 = inlined_call_operand.vmem [shape: bf16[128,384], index: 2, kind: input, shape index: {}]   ;;  %s2115_s1 = inlined_call_operand.vmem [shape: f32[4,384], index: 1, kind: input, shape index: {}]   ;;  %s2116_s0 = inlined_call_operand.vmem [shape: f32[64,4], index: 0, kind: input, shape index: {}]   ;;  %s2117_s4 = inlined_call_operand.vmem [shape: f32[1,128], index: 4, kind: input, shape index: {}]   ;;  %s2118_s3 = inlined_call_operand.vmem [shape: f32[1,384], index: 3, kind: input, shape index: {}]   ;;  %s2119_s6 = inlined_call_operand.vmem [shape: f32[1,32], index: 6, kind: input, shape index: {}]   ;;  %s2120_s5 = inlined_call_operand.vmem [shape: f32[128,32], index: 5, kind: input, shape index: {}]   ;;  %s2121_s7 = inlined_call_operand.vmem [shape: f32[1,32], index: 7, kind: input, shape index: {}]   ;;  %s2122_s8 = inlined_call_operand.<no memory space> [shape: f32[1,1], index: 8, kind: input, shape index: {}]   ;;  %s2123_s9 = inlined_call_operand.vmem [shape: f32[8,1], index: 9, kind: output, shape index: {}]  }
   0x1   :  { %v1268_v0 = vld [vmem:[%s2114_s2 + $0xa8] sm:$0xf]  ;;  %v1317_v1 = vld [vmem:[%s2114_s2 + $0xb0] sm:$0xf0]  ;;  %v1256_v2 = vld [vmem:[%s2114_s2 + $0x90] sm:$0xf] }
   0x2   :  { %v1469_v3 = vor.u32 %v1317_v1, %v1268_v0  ;;  %v1314_v4 = vld [vmem:[%s2114_s2 + $0x98] sm:$0xf0]  ;;  %v43_v5 = vld [vmem:[%s2115_s1] sm:$0xff]  ;;  %v1244_v7 = vld [vmem:[%s2114_s2 + $0x78] sm:$0xf] }
   0x3   :  { %55 = vst [vmem:[#allocation1] ss:$2 sm:$0xff] %v43_v5  ;;  %v1478_v6 = vor.u32 %v1314_v4, %v1256_v2  ;;  %v1311_v8 = vld [vmem:[%s2114_s2 + $0x80] sm:$0xf0]  ;;  %v1276_v9 = vld [vmem:[%s2114_s2 + $0xb0] sm:$0xf] }
   0x4   :  { %380 = vmatpush.bf16.msra.mxu3 %v1469_v3  ;;  %v1318_v10 = vld [vmem:[%s2114_s2 + $0xb8] sm:$0xf0]  ;;  %v1496_v11 = vld [vmem:[%s2116_s0] sm:$0xff]  ;;  %v1498_v12 = vor.u32 %v1311_v8, %v1244_v7  ;;  %v1308_v14 = vld [vmem:[%s2114_s2 + $0x68] sm:$0xf0] }
   0x5   :  { %v1232_v13 = vld [vmem:[%s2114_s2 + $0x60] sm:$0xf]  ;;  %v1506_v15 = vor.u32 %v1318_v10, %v1276_v9  ;;  %v1264_v16 = vld [vmem:[%s2114_s2 + $0x98] sm:$0xf]  ;;  %v1315_v18 = vld [vmem:[%s2114_s2 + $0xa0] sm:$0xf0] }
   0x6   :  { %v1518_v19 = vor.u32 %v1308_v14, %v1232_v13  ;;  %v1220_v20 = vld [vmem:[%s2114_s2 + $0x48] sm:$0xf]  ;;  %v1305_v21 = vld [vmem:[%s2114_s2 + $0x50] sm:$0xf0]  ;;  %v1527_v22 = vor.u32 %v1315_v18, %v1264_v16  ;;  %v1252_v23 = vld [vmem:[%s2114_s2 + $0x80] sm:$0xf] }
   0x7   :  { %v1312_v24 = vld [vmem:[%s2114_s2 + $0x88] sm:$0xf0]  ;;  %v1536_v25 = vor.u32 %v1305_v21, %v1220_v20  ;;  %v1208_v27 = vld [vmem:[%s2114_s2 + $0x30] sm:$0xf]  ;;  %v1302_v28 = vld [vmem:[%s2114_s2 + $0x38] sm:$0xf0] }
   0x8   :  { %381 = vmatpush.bf16.msra.mxu3 %v1478_v6  ;;  %v1541_v26 = vld [vmem:[%s2116_s0 + $0x8] sm:$0xff]  ;;  %v1550_v29 = vor.u32 %v1312_v24, %v1252_v23  ;;  %v1309_v31 = vld [vmem:[%s2114_s2 + $0x70] sm:$0xf0]  ;;  %v1561_v32 = vor.u32 %v1302_v28, %v1208_v27  ;;  %v1196_v33 = vld [vmem:[%s2114_s2 + $0x18] sm:$0xf] }
   0x9   :  { %v1240_v30 = vld [vmem:[%s2114_s2 + $0x68] sm:$0xf]  ;;  %v1299_v34 = vld [vmem:[%s2114_s2 + $0x20] sm:$0xf0]  ;;  %v1228_v36 = vld [vmem:[%s2114_s2 + $0x50] sm:$0xf] }
   0xa   :  { %v58_v17 = vld.sshfl [vmem:[#allocation1] sm:$0xff pattern:$0x75316420]  ;;  %v1570_v35 = vor.u32 %v1309_v31, %v1240_v30  ;;  %v1306_v37 = vld [vmem:[%s2114_s2 + $0x58] sm:$0xf0]  ;;  %v1579_v38 = vor.u32 %v1299_v34, %v1196_v33  ;;  %v1584_v39 = vld [vmem:[%s2116_s0 + $0x10] sm:$0xff] }
   0xb   :  { %1155 = vmatpush.msk.msra.mxu0 %vm86_vm0, %v58_v17  ;;  %v1184_v40 = vld [vmem:[%s2114_s2] sm:$0xf]  ;;  %v1296_v41 = vld [vmem:[%s2114_s2 + $0x8] sm:$0xf0]  ;;  %v1593_v42 = vor.u32 %v1306_v37, %v1228_v36  ;;  %v1270_v44 = vld [vmem:[%s2114_s2 + $0xb4] sm:$0xf0] }
   0xc   :  { %1156 = vmatmul.msk.f32.vlgmr.msra.gmra.mxu0 %vm61_vm1, %v1496_v11  ;;  %382 = vmatpush.bf16.msra.mxu3 %v1498_v12  ;;  %v1316_v43 = vld [vmem:[%s2114_s2 + $0xac] sm:$0xf]  ;;  %v1604_v45 = vor.u32 %v1296_v41, %v1184_v40  ;;  %v1216_v47 = vld [vmem:[%s2114_s2 + $0x38] sm:$0xf]  ;;  %v1303_v48 = vld [vmem:[%s2114_s2 + $0x40] sm:$0xf0] }
   0xd   :  { %406 = vmatpush.bf16.msrb.mxu0 %v1506_v15  ;;  %v1606_v46 = vor.u32 %v1316_v43, %v1270_v44  ;;  %v1313_v49 = vld [vmem:[%s2114_s2 + $0x94] sm:$0xf]  ;;  %v1258_v50 = vld [vmem:[%s2114_s2 + $0x9c] sm:$0xf0]  ;;  %v1621_v51 = vor.u32 %v1303_v48, %v1216_v47  ;;  %v44_v52 = vld [vmem:[%s2115_s1 + $0x8] sm:$0xf] }
   0xe   :  { %57 = vst [vmem:[#allocation1 + $0x10] ss:$2 sm:$0xff] %v44_v52  ;;  %v1631_v53 = vld [vmem:[%s2116_s0 + $0x18] sm:$0xff]  ;;  %v1633_v54 = vor.u32 %v1313_v49, %v1258_v50  ;;  %v1246_v56 = vld [vmem:[%s2114_s2 + $0x84] sm:$0xf0]  ;;  %v1682_v7 = vld [vmem:[%s2116_s0 + $0x20] sm:$0xff] }
   0xf   :  { %v1310_v55 = vld [vmem:[%s2114_s2 + $0x7c] sm:$0xf]  ;;  %v1204_v57 = vld [vmem:[%s2114_s2 + $0x20] sm:$0xf]  ;;  %v1300_v58 = vld [vmem:[%s2114_s2 + $0x28] sm:$0xf0] }
  0x10   :  { %383 = vmatpush.bf16.msra.mxu3 %v1518_v19  ;;  %v59_v60 = vld.sshfl [vmem:[#allocation1 + $0x8] sm:$0xff pattern:$0x75316420]  ;;  %v1649_v61 = vor.u32 %v1300_v58, %v1204_v57  ;;  %v1297_v63 = vld [vmem:[%s2114_s2 + $0x10] sm:$0xf0]  ;;  %v1661_v0 = vor.u32 %v1310_v55, %v1246_v56  ;;  %v42_v28 = vld [vmem:[%s2116_s0 + $0x38] sm:$0xff] }
  0x11   :  { %407 = vmatpush.bf16.msrb.mxu0 %v1527_v22  ;;  %1164 = vmatpush.msk.msra.mxu1 %vm86_vm0, %v59_v60  ;;  %v1192_v62 = vld [vmem:[%s2114_s2 + $0x8] sm:$0xf]  ;;  %v1307_v1 = vld [vmem:[%s2114_s2 + $0x64] sm:$0xf]  ;;  %v1234_v2 = vld [vmem:[%s2114_s2 + $0x6c] sm:$0xf0] }
  0x12   :  { %1165 = vmatmul.msk.f32.vlgmr.msra.gmra.mxu1 %vm61_vm1, %v1496_v11  ;;  %v1672_v5 = vor.u32 %v1297_v63, %v1192_v62  ;;  %v1684_v8 = vor.u32 %v1307_v1, %v1234_v2  ;;  %v1304_v9 = vld [vmem:[%s2114_s2 + $0x4c] sm:$0xf]  ;;  %v1222_v10 = vld [vmem:[%s2114_s2 + $0x54] sm:$0xf0]  ;;  %v1301_v13 = vld [vmem:[%s2114_s2 + $0x34] sm:$0xf] }
  0x13   :  { %467 = vmatpush.bf16.msrb.mxu1 %v1469_v3  ;;  %v1210_v14 = vld [vmem:[%s2114_s2 + $0x3c] sm:$0xf0]  ;;  %v40_v16 = vld [vmem:[%s2116_s0 + $0x28] sm:$0xff]  ;;  %v1298_v18 = vld [vmem:[%s2114_s2 + $0x1c] sm:$0xf] }
  0x14   :  { %1157 = vmatmul.msk.f32.gmra.mxu0 %vm61_vm1, %v1541_v26  ;;  %384 = vmatpush.bf16.msra.mxu3 %v1536_v25  ;;  %v1718_v17 = vor.u32 %v1301_v13, %v1210_v14  ;;  %v1198_v20 = vld [vmem:[%s2114_s2 + $0x24] sm:$0xf0]  ;;  %v1295_v23 = vld [vmem:[%s2114_s2 + $0x4] sm:$0xf]  ;;  %v1186_v24 = vld [vmem:[%s2114_s2 + $0xc] sm:$0xf0] }
  0x15   :  { %408 = vmatpush.bf16.msrb.mxu0 %v1550_v29  ;;  %v60_v4 = vld.sshfl [vmem:[#allocation1 + $0x10] sm:$0xff pattern:$0x75316420]  ;;  %v1731_v21 = vor.u32 %v1298_v18, %v1198_v20  ;;  %v1750_v27 = vor.u32 %v1295_v23, %v1186_v24  ;;  %v45_v31 = vld [vmem:[%s2118_s3] sm:$0x7] }
  0x16   :  { %1173 = vmatpush.msk.msra.mxu2 %vm86_vm0, %v60_v4  ;;  %v47_v33 = vperm.slane %v45_v31, 0  ;;  %v1840_v63 = vperm.slane %v45_v31, 1  ;;  %v1848_v18 = vld [vmem:[%s2117_s4] ss:$0 sm:$0xff] }
  0x17   :  { %1174 = vmatmul.msk.f32.vlgmr.msra.gmra.mxu2 %vm61_vm1, %v1496_v11  ;;  %468 = vmatpush.bf16.msrb.mxu1 %v1478_v6  ;;  %v1699_v11 = vor.u32 %v1304_v9, %v1222_v10 }
  0x18   :  { %385 = vmatpush.bf16.msra.mxu3 %v1561_v32  ;;  %480 = vmatpush.bf16.msrb.mxu2 %v1606_v46 }
  0x19   :  { %409 = vmatpush.bf16.msrb.mxu0 %v1570_v35 }
  0x1a   :  { %1166 = vmatmul.msk.f32.gmra.mxu1 %vm61_vm1, %v1541_v26 }
  0x1b   :  { %469 = vmatpush.bf16.msrb.mxu1 %v1498_v12 }
  0x1c   :  { %1158 = vmatmul.msk.f32.gmra.mxu0 %vm61_vm1, %v1584_v39  ;;  %386 = vmatpush.bf16.msra.mxu3 %v1579_v38 }
  0x1d   :  { %410 = vmatpush.bf16.msrb.mxu0 %v1593_v42  ;;  %481 = vmatpush.bf16.msrb.mxu2 %v1633_v54 }
  0x1f   :  { %1175 = vmatmul.msk.f32.gmra.mxu2 %vm61_vm1, %v1541_v26  ;;  %470 = vmatpush.bf16.msrb.mxu1 %v1518_v19  ;;  %v41_v26 = vld [vmem:[%s2116_s0 + $0x30] sm:$0xff] }
  0x20   :  { %387 = vmatpush.bf16.msra.mxu3 %v1604_v45 }
  0x21   :  { %411 = vmatpush.bf16.msrb.mxu0 %v1621_v51  ;;  %482 = vmatpush.bf16.msrb.mxu2 %v1661_v0 }
  0x22   :  { %1167 = vmatmul.msk.f32.gmra.mxu1 %vm61_vm1, %v1584_v39 }
  0x23   :  { %388 = vmatmul.bf16.vlgmr.msra.gmra.mxu3 %v1409_v59  ;;  %471 = vmatpush.bf16.msrb.mxu1 %v1536_v25 }
  0x24   :  { %393 = vmatpush.bf16.msrb.mxu3 %v1606_v46  ;;  %1159 = vmatmul.msk.f32.gmra.mxu0 %vm61_vm1, %v1631_v53 }
  0x25   :  { %412 = vmatpush.bf16.msrb.mxu0 %v1649_v61  ;;  %483 = vmatpush.bf16.msrb.mxu2 %v1684_v8 }
  0x27   :  { %1176 = vmatmul.msk.f32.gmra.mxu2 %vm61_vm1, %v1584_v39  ;;  %472 = vmatpush.bf16.msrb.mxu1 %v1561_v32 }
  0x28   :  { %394 = vmatpush.bf16.msrb.mxu3 %v1633_v54 }
  0x29   :  { %413 = vmatpush.bf16.msrb.mxu0 %v1672_v5  ;;  %484 = vmatpush.bf16.msrb.mxu2 %v1699_v11 }
  0x2a   :  { %1168 = vmatmul.msk.f32.gmra.mxu1 %vm61_vm1, %v1631_v53 }
  0x2b   :  { %473 = vmatpush.bf16.msrb.mxu1 %v1579_v38 }
  0x2c   :  { %395 = vmatpush.bf16.msrb.mxu3 %v1661_v0  ;;  %1160 = vmatmul.msk.f32.gmra.mxu0 %vm61_vm1, %v1682_v7 }
  0x2d   :  { %554 = vmatpush.bf16.msra.mxu0 %v1469_v3  ;;  %485 = vmatpush.bf16.msrb.mxu2 %v1718_v17 }
  0x2f   :  { %1177 = vmatmul.msk.f32.gmra.mxu2 %vm61_vm1, %v1631_v53  ;;  %474 = vmatpush.bf16.msrb.mxu1 %v1604_v45 }
  0x30   :  { %396 = vmatpush.bf16.msrb.mxu3 %v1684_v8 }
  0x31   :  { %555 = vmatpush.bf16.msra.mxu0 %v1478_v6  ;;  %486 = vmatpush.bf16.msrb.mxu2 %v1731_v21 }
  0x32   :  { %1169 = vmatmul.msk.f32.gmra.mxu1 %vm61_vm1, %v1682_v7 }
  0x33   :  { %567 = vmatpush.bf16.msra.mxu1 %v1606_v46 }
  0x34   :  { %397 = vmatpush.bf16.msrb.mxu3 %v1699_v11  ;;  %1161 = vmatmul.msk.f32.gmra.mxu0 %vm61_vm1, %v40_v16 }
  0x35   :  { %556 = vmatpush.bf16.msra.mxu0 %v1498_v12  ;;  %487 = vmatpush.bf16.msrb.mxu2 %v1750_v27 }
  0x37   :  { %1178 = vmatmul.msk.f32.gmra.mxu2 %vm61_vm1, %v1682_v7  ;;  %568 = vmatpush.bf16.msra.mxu1 %v1633_v54 }
  0x38   :  { %398 = vmatpush.bf16.msrb.mxu3 %v1718_v17 }
  0x39   :  { %557 = vmatpush.bf16.msra.mxu0 %v1518_v19  ;;  %580 = vmatpush.bf16.msra.mxu2 %v1506_v15 }
  0x3a   :  { %1170 = vmatmul.msk.f32.gmra.mxu1 %vm61_vm1, %v40_v16 }
  0x3b   :  { %569 = vmatpush.bf16.msra.mxu1 %v1661_v0 }
  0x3c   :  { %399 = vmatpush.bf16.msrb.mxu3 %v1731_v21  ;;  %1162 = vmatmul.msk.f32.gmra.mxu0 %vm61_vm1, %v41_v26 }
  0x3d   :  { %558 = vmatpush.bf16.msra.mxu0 %v1536_v25  ;;  %581 = vmatpush.bf16.msra.mxu2 %v1527_v22 }
  0x3f   :  { %1179 = vmatmul.msk.f32.gmra.mxu2 %vm61_vm1, %v40_v16  ;;  %570 = vmatpush.bf16.msra.mxu1 %v1684_v8 }
  0x40   :  { %400 = vmatpush.bf16.msrb.mxu3 %v1750_v27 }
  0x41   :  { %559 = vmatpush.bf16.msra.mxu0 %v1561_v32  ;;  %582 = vmatpush.bf16.msra.mxu2 %v1550_v29 }
  0x42   :  { %1171 = vmatmul.msk.f32.gmra.mxu1 %vm61_vm1, %v41_v26 }
  0x43   :  { %401 = vmatmul.bf16.vlgmr.msrb.gmra.mxu3 %v1409_v59  ;;  %571 = vmatpush.bf16.msra.mxu1 %v1699_v11 }
  0x44   :  { %493 = vmatpush.bf16.msra.mxu3 %v1506_v15  ;;  %1163 = vmatmul.msk.f32.gmra.mxu0 %vm61_vm1, %v42_v28 }
  0x45   :  { %560 = vmatpush.bf16.msra.mxu0 %v1579_v38  ;;  %583 = vmatpush.bf16.msra.mxu2 %v1570_v35 }
  0x47   :  { %1180 = vmatmul.msk.f32.gmra.mxu2 %vm61_vm1, %v41_v26  ;;  %572 = vmatpush.bf16.msra.mxu1 %v1718_v17 }
  0x48   :  { %494 = vmatpush.bf16.msra.mxu3 %v1527_v22 }
  0x49   :  { %561 = vmatpush.bf16.msra.mxu0 %v1604_v45  ;;  %584 = vmatpush.bf16.msra.mxu2 %v1593_v42 }
  0x4a   :  { %1172 = vmatmul.msk.f32.gmra.mxu1 %vm61_vm1, %v42_v28 }
  0x4b   :  { %573 = vmatpush.bf16.msra.mxu1 %v1731_v21 }
  0x4c   :  { %495 = vmatpush.bf16.msra.mxu3 %v1550_v29  ;;  %414 = vmatmul.bf16.vlgmr.msrb.gmra.mxu0 %v1409_v59 }
  0x4d   :  { %654 = vmatpush.bf16.msrb.mxu0 %v1606_v46  ;;  %585 = vmatpush.bf16.msra.mxu2 %v1621_v51 }
  0x4f   :  { %1181 = vmatmul.msk.f32.gmra.mxu2 %vm61_vm1, %v42_v28  ;;  %574 = vmatpush.bf16.msra.mxu1 %v1750_v27 }
  0x50   :  { %496 = vmatpush.bf16.msra.mxu3 %v1570_v35 }
  0x51   :  { %655 = vmatpush.bf16.msrb.mxu0 %v1633_v54  ;;  %586 = vmatpush.bf16.msra.mxu2 %v1649_v61 }
  0x54   :  { %497 = vmatpush.bf16.msra.mxu3 %v1593_v42 }
  0x55   :  { %656 = vmatpush.bf16.msrb.mxu0 %v1661_v0  ;;  %587 = vmatpush.bf16.msra.mxu2 %v1672_v5 }
  0x58   :  { %498 = vmatpush.bf16.msra.mxu3 %v1621_v51 }
  0x59   :  { %657 = vmatpush.bf16.msrb.mxu0 %v1684_v8 }
  0x5c   :  { %499 = vmatpush.bf16.msra.mxu3 %v1649_v61 }
  0x5d   :  { %658 = vmatpush.bf16.msrb.mxu0 %v1699_v11 }
  0x60   :  { %500 = vmatpush.bf16.msra.mxu3 %v1672_v5 }
  0x61   :  { %659 = vmatpush.bf16.msrb.mxu0 %v1718_v17 }
  0x64   :  { %641 = vmatpush.bf16.msrb.mxu3 %v1469_v3 }
  0x65   :  { %660 = vmatpush.bf16.msrb.mxu0 %v1731_v21 }
  0x68   :  { %642 = vmatpush.bf16.msrb.mxu3 %v1478_v6 }
  0x69   :  { %661 = vmatpush.bf16.msrb.mxu0 %v1750_v27 }
  0x6c   :  { %643 = vmatpush.bf16.msrb.mxu3 %v1498_v12 }
  0x70   :  { %644 = vmatpush.bf16.msrb.mxu3 %v1518_v19 }
  0x74   :  { %645 = vmatpush.bf16.msrb.mxu3 %v1536_v25 }
  0x78   :  { %646 = vmatpush.bf16.msrb.mxu3 %v1561_v32 }
  0x7c   :  { %647 = vmatpush.bf16.msrb.mxu3 %v1579_v38 }
  0x80   :  { %648 = vmatpush.bf16.msrb.mxu3 %v1604_v45 }
  0x89   :  { %v110_v30 = vpop.f32.mrf.mxu0 }
  0x8a   :  { %v111_v43 = vadd.f32 %v110_v30, %v47_v33 }
  0x8f   :  { %v151_v1 = vpop.f32.mrf.mxu1 }
  0x90   :  { %v152_v4 = vadd.f32 %v151_v1, %v1840_v63 }
  0x91   :  { %v113_v34 = vpop.f32.mrf.mxu0 }
  0x92   :  { %v1828_v36 = vadd.f32 %v113_v34, %v47_v33 }
  0x99   :  { %v116_v37 = vpop.f32.mrf.mxu0 }
  0x9a   :  { %v1830_v39 = vadd.f32 %v116_v37, %v47_v33 }
  0xa1   :  { %v119_v40 = vpop.f32.mrf.mxu0 }
  0xa2   :  { %v1832_v41 = vadd.f32 %v119_v40, %v47_v33  ;;  %v192_v40 = vpop.f32.mrf.mxu2 }
  0xa6   :  { %v389_v44 = vpop.f32.mrf.mxu3 }
  0xa7   :  { %v419_v47 = vadd.f32 %v389_v44, %v111_v43 }
  0xa9   :  { %v1278_v48 = vmul.f32 -1.442695, %v419_v47  ;;  %v122_v49 = vpop.f32.mrf.mxu0 }
  0xaa   :  { %v1834_v50 = vadd.f32 %v122_v49, %v47_v33 }
  0xab   :  { %1324 = vpow2.f32 %v1278_v48 }
  0xae   :  { %v391_v52 = vpop.f32.mrf.mxu3 }
  0xb1   :  { %v1325_v53 = vpop.eup %1324  ;;  %v125_v55 = vpop.f32.mrf.mxu0 }
  0xb2   :  { %v427_v56 = vadd.f32 1.0, %v1325_v53  ;;  %v1836_v57 = vadd.f32 %v125_v55, %v47_v33 }
  0xb4   :  { %1326 = vrcp.f32 %v427_v56  ;;  %v440_v23 = vand.u32 2147483648, %v427_v56  ;;  %vm434_vm3 = vweird.f32 %v427_v56  ;;  %v438_v26 = vand.u32 2147483647, %v427_v56 }
  0xb6   :  { %v441_v37 = vor.u32 1.1754944e-38, %v440_v23  ;;  %vm439_vm5 = vcmp.eq.f32.partialorder %v438_v26, 8.507059e+37  ;;  %v154_v23 = vpop.f32.mrf.mxu1 }
  0xb9   :  { %v128_v58 = vpop.f32.mrf.mxu0 }
  0xba   :  { %v1327_v59 = vpop.eup %1326  ;;  %v1838_v60 = vadd.f32 %v128_v58, %v47_v33 }
  0xbb   :  { %v430_v62 = vmul.f32 %v1327_v59, %v427_v56  ;;  %vm435_vm2 = vweird.f32 %v1327_v59 }
  0xbc   :  { %vm436_vm4 = vmor %vm434_vm3, %vm435_vm2 }
  0xbd   :  { %v431_v2 = vsub.f32 1.0, %v430_v62 }
  0xbe   :  { %v1882_v26 = vpop.f32.mrf.mxu1 }
  0xbf   :  { %v432_v13 = vmul.f32 %v1327_v59, %v431_v2 }
  0xc1   :  { %v131_v7 = vpop.f32.mrf.mxu0  ;;  %v433_v20 = vadd.f32 %v1327_v59, %v432_v13 }
  0xc2   :  { %v1843_v9 = vadd.f32 %v131_v7, %v47_v33  ;;  %v1851_v33 = vperm.slane %v45_v31, 2 }
  0xc3   :  { %v437_v28 = vsel %vm436_vm4, %v1327_v59, %v433_v20 }
  0xc4   :  { %2124 = vst [vmem:[#allocation3_spill] sm:$0xff] %v1843_v9  ;;  %v442_v44 = vsel %vm439_vm5, %v441_v37, %v437_v28  ;;  %v193_v49 = vadd.f32 %v192_v40, %v1851_v33 }
  0xc6   :  { %v402_v10 = vpop.f32.mrf.mxu3 }
  0xc7   :  { %v420_v14 = vadd.f32 %v402_v10, %v152_v4 }
  0xc9   :  { %v1279_v16 = vmul.f32 -1.442695, %v420_v14  ;;  %v415_v24 = vpop.f32.mrf.mxu0 }
  0xca   :  { %v459_v30 = vadd.f32 %v1848_v18, %v415_v24  ;;  %v195_v24 = vpop.f32.mrf.mxu2 }
  0xcb   :  { %1328 = vpow2.f32 %v1279_v16 }
  0xcc   :  { %v460_v48 = vmul.f32 %v459_v30, %v442_v44  ;;  %v1886_v30 = vpop.f32.mrf.mxu1 }
  0xce   :  { %v404_v34 = vpop.f32.mrf.mxu3  ;;  %v461_v53 = vadd.f32 %v460_v48, %v193_v49 }
  0xd1   :  { %v1329_v43 = vpop.eup %1328  ;;  %v417_v52 = vpop.f32.mrf.mxu0 }
  0xd2   :  { %v428_v47 = vadd.f32 1.0, %v1329_v43  ;;  %v1884_v28 = vpop.f32.mrf.mxu2 }
  0xd4   :  { %1330 = vrcp.f32 %v428_v47  ;;  %v455_v59 = vand.u32 2147483648, %v428_v47  ;;  %v453_v62 = vand.u32 2147483647, %v428_v47  ;;  %vm449_vm7 = vweird.f32 %v428_v47  ;;  %v1890_v37 = vpop.f32.mrf.mxu1 }
  0xd5   :  { %1332 = vtanh.f32 %v461_v53 }
  0xd6   :  { %v456_v4 = vor.u32 1.1754944e-38, %v455_v59  ;;  %vm454_vm9 = vcmp.eq.f32.partialorder %v453_v62, 8.507059e+37 }
  0xda   :  { %v1331_v55 = vpop.eup %1330  ;;  %v1888_v34 = vpop.f32.mrf.mxu2 }
  0xdb   :  { %v445_v56 = vmul.f32 %v1331_v55, %v428_v47  ;;  %vm450_vm6 = vweird.f32 %v1331_v55  ;;  %v1333_v1 = vpop.eup %1332 }
  0xdc   :  { %vm451_vm8 = vmor %vm449_vm7, %vm450_vm6  ;;  %v463_v10 = vsub.f32 0.0, %v1333_v1  ;;  %v1894_v43 = vpop.f32.mrf.mxu1 }
  0xdd   :  { %v446_v58 = vsub.f32 1.0, %v445_v56 }
  0xdf   :  { %v447_v31 = vmul.f32 %v1331_v55, %v446_v58  ;;  %v155_v58 = vadd.f32 %v154_v23, %v1840_v63 }
  0xe1   :  { %v448_v2 = vadd.f32 %v1331_v55, %v447_v31 }
  0xe2   :  { %v1892_v40 = vpop.f32.mrf.mxu2 }
  0xe3   :  { %v452_v7 = vsel %vm451_vm8, %v1331_v55, %v448_v2 }
  0xe4   :  { %v457_v13 = vsel %vm454_vm9, %v456_v4, %v452_v7  ;;  %v1898_v47 = vpop.f32.mrf.mxu1 }
  0xe5   :  { %v464_v14 = vmul.f32 %v463_v10, %v457_v13 }
  0xe7   :  { %v1854_v16 = vadd.f32 %v1333_v1, %v464_v14 }
  0xe9   :  { %v466_v20 = vpack.c.bf16 %v1854_v16, %v1854_v16 }
  0xea   :  { %v1896_v44 = vpop.f32.mrf.mxu2 }
  0xeb   :  { %475 = vmatmul.bf16.vlgmr.msrb.gmra.mxu1 %v466_v20  ;;  %488 = vmatmul.bf16.vlgmr.msrb.gmra.mxu2 %v466_v20 }
  0xec   :  { %501 = vmatmul.bf16.vlgmr.msra.gmra.mxu3 %v466_v20  ;;  %667 = vmatpush.bf16.msrb.mxu1 %v1506_v15  ;;  %v1902_v49 = vpop.f32.mrf.mxu1 }
  0xed   :  { %728 = vmatpush.bf16.msrb.mxu2 %v1469_v3  ;;  %741 = vmatpush.bf16.msra.mxu3 %v1606_v46  ;;  %2126 = vst [vmem:[#allocation5_spill] sm:$0xff] %v1902_v49 }
  0xf0   :  { %668 = vmatpush.bf16.msrb.mxu1 %v1527_v22 }
  0xf1   :  { %729 = vmatpush.bf16.msrb.mxu2 %v1478_v6  ;;  %742 = vmatpush.bf16.msra.mxu3 %v1633_v54 }
  0xf2   :  { %v1900_v48 = vpop.f32.mrf.mxu2 }
  0xf3   :  { %2125 = vst [vmem:[#allocation4_spill] sm:$0xff] %v1900_v48 }
  0xf4   :  { %669 = vmatpush.bf16.msrb.mxu1 %v1550_v29 }
  0xf5   :  { %730 = vmatpush.bf16.msrb.mxu2 %v1498_v12  ;;  %743 = vmatpush.bf16.msra.mxu3 %v1661_v0 }
  0xf8   :  { %670 = vmatpush.bf16.msrb.mxu1 %v1570_v35 }
  0xf9   :  { %731 = vmatpush.bf16.msrb.mxu2 %v1518_v19  ;;  %744 = vmatpush.bf16.msra.mxu3 %v1684_v8 }
  0xfa   :  { %v1904_v52 = vpop.f32.mrf.mxu2 }
  0xfb   :  { %2127 = vst [vmem:[#allocation6_spill] sm:$0xff] %v1904_v52 }
  0xfc   :  { %671 = vmatpush.bf16.msrb.mxu1 %v1593_v42 }
  0xfd   :  { %732 = vmatpush.bf16.msrb.mxu2 %v1536_v25  ;;  %745 = vmatpush.bf16.msra.mxu3 %v1699_v11 }
 0x100   :  { %672 = vmatpush.bf16.msrb.mxu1 %v1621_v51 }
 0x101   :  { %733 = vmatpush.bf16.msrb.mxu2 %v1561_v32  ;;  %746 = vmatpush.bf16.msra.mxu3 %v1718_v17 }
 0x104   :  { %673 = vmatpush.bf16.msrb.mxu1 %v1649_v61 }
 0x105   :  { %734 = vmatpush.bf16.msrb.mxu2 %v1579_v38  ;;  %747 = vmatpush.bf16.msra.mxu3 %v1731_v21 }
 0x108   :  { %674 = vmatpush.bf16.msrb.mxu1 %v1672_v5 }
 0x109   :  { %735 = vmatpush.bf16.msrb.mxu2 %v1604_v45  ;;  %748 = vmatpush.bf16.msra.mxu3 %v1750_v27 }
 0x168   :  { %v476_v53 = vpop.f32.mrf.mxu1 }
 0x169   :  { %v506_v55 = vadd.f32 %v476_v53, %v1828_v36 }
 0x16b   :  { %v1280_v56 = vmul.f32 -1.442695, %v506_v55 }
 0x16d   :  { %1334 = vpow2.f32 %v1280_v56 }
 0x16e   :  { %v489_v59 = vpop.f32.mrf.mxu2 }
 0x16f   :  { %v507_v31 = vadd.f32 %v489_v59, %v155_v58  ;;  %v502_v62 = vpop.f32.mrf.mxu3 }
 0x170   :  { %v478_v1 = vpop.f32.mrf.mxu1 }
 0x171   :  { %v1281_v2 = vmul.f32 -1.442695, %v507_v31 }
 0x173   :  { %v1335_v4 = vpop.eup %1334  ;;  %1336 = vpow2.f32 %v1281_v2 }
 0x174   :  { %v514_v7 = vadd.f32 1.0, %v1335_v4 }
 0x176   :  { %1338 = vrcp.f32 %v514_v7  ;;  %v491_v10 = vpop.f32.mrf.mxu2  ;;  %v527_v55 = vand.u32 2147483648, %v514_v7  ;;  %v525_v56 = vand.u32 2147483647, %v514_v7  ;;  %vm521_vm11 = vweird.f32 %v514_v7 }
 0x177   :  { %v504_v13 = vpop.f32.mrf.mxu3  ;;  %v546_v10 = vadd.f32 %v1848_v18, %v502_v62 }
 0x178   :  { %v528_v31 = vor.u32 1.1754944e-38, %v527_v55  ;;  %vm526_vm13 = vcmp.eq.f32.partialorder %v525_v56, 8.507059e+37 }
 0x179   :  { %v1337_v14 = vpop.eup %1336 }
 0x17a   :  { %v515_v20 = vadd.f32 1.0, %v1337_v14  ;;  %v196_v14 = vadd.f32 %v195_v24, %v1851_v33 }
 0x17c   :  { %v1339_v52 = vpop.eup %1338  ;;  %1340 = vrcp.f32 %v515_v20  ;;  %v542_v48 = vand.u32 2147483648, %v515_v20  ;;  %vm536_vm15 = vweird.f32 %v515_v20 }
 0x17d   :  { %v517_v36 = vmul.f32 %v1339_v52, %v514_v7  ;;  %vm522_vm10 = vweird.f32 %v1339_v52 }
 0x17e   :  { %vm523_vm12 = vmor %vm521_vm11, %vm522_vm10 }
 0x17f   :  { %v518_v53 = vsub.f32 1.0, %v517_v36 }
 0x181   :  { %v519_v23 = vmul.f32 %v1339_v52, %v518_v53 }
 0x182   :  { %v1341_v58 = vpop.eup %1340 }
 0x183   :  { %v532_v59 = vmul.f32 %v1341_v58, %v515_v20  ;;  %v520_v1 = vadd.f32 %v1339_v52, %v519_v23  ;;  %vm537_vm14 = vweird.f32 %v1341_v58  ;;  %v540_v23 = vand.u32 2147483647, %v515_v20 }
 0x184   :  { %vm538_vm0 = vmor %vm536_vm15, %vm537_vm14 }
 0x185   :  { %v533_v2 = vsub.f32 1.0, %v532_v59  ;;  %v524_v4 = vsel %vm523_vm12, %v1339_v52, %v520_v1  ;;  %v543_v59 = vor.u32 1.1754944e-38, %v542_v48  ;;  %vm541_vm1 = vcmp.eq.f32.partialorder %v540_v23, 8.507059e+37 }
 0x186   :  { %v529_v13 = vsel %vm526_vm13, %v528_v31, %v524_v4 }
 0x187   :  { %v547_v9 = vmul.f32 %v546_v10, %v529_v13  ;;  %v534_v36 = vmul.f32 %v1341_v58, %v533_v2 }
 0x189   :  { %v548_v49 = vadd.f32 %v547_v9, %v196_v14  ;;  %v535_v53 = vadd.f32 %v1341_v58, %v534_v36 }
 0x18b   :  { %1342 = vtanh.f32 %v548_v49  ;;  %v539_v7 = vsel %vm538_vm0, %v1341_v58, %v535_v53 }
 0x18c   :  { %v544_v62 = vsel %vm541_vm1, %v543_v59, %v539_v7 }
 0x191   :  { %v1343_v55 = vpop.eup %1342 }
 0x192   :  { %v550_v52 = vsub.f32 %v1854_v16, %v1343_v55  ;;  %v158_v16 = vadd.f32 %v1882_v26, %v1840_v63 }
 0x194   :  { %v551_v56 = vmul.f32 %v550_v52, %v544_v62 }
 0x196   :  { %v1911_v1 = vadd.f32 %v1343_v55, %v551_v56 }
 0x198   :  { %v553_v9 = vpack.c.bf16 %v1911_v1, %v1911_v1 }
 0x19a   :  { %562 = vmatmul.bf16.vlgmr.msra.gmra.mxu0 %v553_v9  ;;  %575 = vmatmul.bf16.vlgmr.msra.gmra.mxu1 %v553_v9 }
 0x19b   :  { %588 = vmatmul.bf16.vlgmr.msra.gmra.mxu2 %v553_v9  ;;  %754 = vmatpush.bf16.msra.mxu0 %v1506_v15 }
 0x19c   :  { %815 = vmatpush.bf16.msra.mxu1 %v1469_v3  ;;  %828 = vmatpush.bf16.msra.mxu2 %v1606_v46 }
 0x19f   :  { %755 = vmatpush.bf16.msra.mxu0 %v1527_v22 }
 0x1a0   :  { %816 = vmatpush.bf16.msra.mxu1 %v1478_v6  ;;  %829 = vmatpush.bf16.msra.mxu2 %v1633_v54 }
 0x1a3   :  { %756 = vmatpush.bf16.msra.mxu0 %v1550_v29 }
 0x1a4   :  { %817 = vmatpush.bf16.msra.mxu1 %v1498_v12  ;;  %830 = vmatpush.bf16.msra.mxu2 %v1661_v0 }
 0x1a7   :  { %757 = vmatpush.bf16.msra.mxu0 %v1570_v35 }
 0x1a8   :  { %818 = vmatpush.bf16.msra.mxu1 %v1518_v19  ;;  %831 = vmatpush.bf16.msra.mxu2 %v1684_v8 }
 0x1ab   :  { %758 = vmatpush.bf16.msra.mxu0 %v1593_v42 }
 0x1ac   :  { %819 = vmatpush.bf16.msra.mxu1 %v1536_v25  ;;  %832 = vmatpush.bf16.msra.mxu2 %v1699_v11 }
 0x1af   :  { %759 = vmatpush.bf16.msra.mxu0 %v1621_v51 }
 0x1b0   :  { %820 = vmatpush.bf16.msra.mxu1 %v1561_v32  ;;  %833 = vmatpush.bf16.msra.mxu2 %v1718_v17 }
 0x1b3   :  { %760 = vmatpush.bf16.msra.mxu0 %v1649_v61 }
 0x1b4   :  { %821 = vmatpush.bf16.msra.mxu1 %v1579_v38  ;;  %834 = vmatpush.bf16.msra.mxu2 %v1731_v21 }
 0x1b7   :  { %761 = vmatpush.bf16.msra.mxu0 %v1672_v5 }
 0x1b8   :  { %822 = vmatpush.bf16.msra.mxu1 %v1604_v45  ;;  %835 = vmatpush.bf16.msra.mxu2 %v1750_v27 }
 0x217   :  { %v563_v24 = vpop.f32.mrf.mxu0  ;;  %v576_v48 = vpop.f32.mrf.mxu1 }
 0x218   :  { %v593_v49 = vadd.f32 %v563_v24, %v1830_v39  ;;  %v594_v20 = vadd.f32 %v576_v48, %v158_v16 }
 0x21a   :  { %v1282_v58 = vmul.f32 -1.442695, %v593_v49  ;;  %v1283_v31 = vmul.f32 -1.442695, %v594_v20 }
 0x21c   :  { %1344 = vpow2.f32 %v1282_v58  ;;  %v199_v58 = vadd.f32 %v1884_v28, %v1851_v33 }
 0x21d   :  { %1346 = vpow2.f32 %v1283_v31 }
 0x21e   :  { %v589_v2 = vpop.f32.mrf.mxu2 }
 0x21f   :  { %v565_v4 = vpop.f32.mrf.mxu0  ;;  %v578_v10 = vpop.f32.mrf.mxu1  ;;  %v633_v49 = vadd.f32 %v1848_v18, %v589_v2 }
 0x222   :  { %v1345_v13 = vpop.eup %1344 }
 0x223   :  { %v1347_v14 = vpop.eup %1346  ;;  %v601_v36 = vadd.f32 1.0, %v1345_v13 }
 0x224   :  { %v602_v53 = vadd.f32 1.0, %v1347_v14 }
 0x225   :  { %1348 = vrcp.f32 %v601_v36  ;;  %v614_v52 = vand.u32 2147483648, %v601_v36  ;;  %v612_v56 = vand.u32 2147483647, %v601_v36  ;;  %vm608_vm3 = vweird.f32 %v601_v36 }
 0x226   :  { %1350 = vrcp.f32 %v602_v53  ;;  %v591_v23 = vpop.f32.mrf.mxu2  ;;  %v629_v14 = vand.u32 2147483648, %v602_v53  ;;  %vm623_vm7 = vweird.f32 %v602_v53 }
 0x227   :  { %v615_v24 = vor.u32 1.1754944e-38, %v614_v52  ;;  %vm613_vm5 = vcmp.eq.f32.partialorder %v612_v56, 8.507059e+37 }
 0x22b   :  { %v1349_v26 = vpop.eup %1348 }
 0x22c   :  { %v1351_v7 = vpop.eup %1350  ;;  %v604_v55 = vmul.f32 %v1349_v26, %v601_v36  ;;  %vm609_vm2 = vweird.f32 %v1349_v26  ;;  %v627_v36 = vand.u32 2147483647, %v602_v53 }
 0x22d   :  { %v619_v39 = vmul.f32 %v1351_v7, %v602_v53  ;;  %vm610_vm4 = vmor %vm608_vm3, %vm609_vm2  ;;  %vm624_vm6 = vweird.f32 %v1351_v7 }
 0x22e   :  { %v605_v59 = vsub.f32 1.0, %v604_v55  ;;  %vm625_vm8 = vmor %vm623_vm7, %vm624_vm6  ;;  %vm628_vm9 = vcmp.eq.f32.partialorder %v627_v36, 8.507059e+37 }
 0x22f   :  { %v620_v16 = vsub.f32 1.0, %v619_v39 }
 0x230   :  { %v606_v62 = vmul.f32 %v1349_v26, %v605_v59 }
 0x231   :  { %v621_v4 = vmul.f32 %v1351_v7, %v620_v16 }
 0x232   :  { %v607_v9 = vadd.f32 %v1349_v26, %v606_v62 }
 0x233   :  { %v622_v13 = vadd.f32 %v1351_v7, %v621_v4 }
 0x234   :  { %v611_v48 = vsel %vm610_vm4, %v1349_v26, %v607_v9  ;;  %v630_v26 = vor.u32 1.1754944e-38, %v629_v14 }
 0x235   :  { %v616_v20 = vsel %vm613_vm5, %v615_v24, %v611_v48  ;;  %v626_v23 = vsel %vm625_vm8, %v1351_v7, %v622_v13 }
 0x236   :  { %v634_v31 = vmul.f32 %v633_v49, %v616_v20  ;;  %v631_v2 = vsel %vm628_vm9, %v630_v26, %v626_v23 }
 0x238   :  { %v635_v10 = vadd.f32 %v634_v31, %v199_v58 }
 0x23a   :  { %1352 = vtanh.f32 %v635_v10 }
 0x240   :  { %v1353_v55 = vpop.eup %1352 }
 0x241   :  { %v637_v59 = vsub.f32 %v1911_v1, %v1353_v55  ;;  %v161_v1 = vadd.f32 %v1886_v30, %v1840_v63 }
 0x243   :  { %v638_v39 = vmul.f32 %v637_v59, %v631_v2 }
 0x245   :  { %v1946_v52 = vadd.f32 %v1353_v55, %v638_v39 }
 0x247   :  { %v640_v28 = vpack.c.bf16 %v1946_v52, %v1946_v52 }
 0x249   :  { %649 = vmatmul.bf16.vlgmr.msrb.gmra.mxu3 %v640_v28  ;;  %662 = vmatmul.bf16.vlgmr.msrb.gmra.mxu0 %v640_v28 }
 0x24a   :  { %675 = vmatmul.bf16.vlgmr.msrb.gmra.mxu1 %v640_v28  ;;  %841 = vmatpush.bf16.msrb.mxu3 %v1506_v15 }
 0x24b   :  { %902 = vmatpush.bf16.msrb.mxu0 %v1469_v3  ;;  %915 = vmatpush.bf16.msrb.mxu1 %v1606_v46 }
 0x24e   :  { %842 = vmatpush.bf16.msrb.mxu3 %v1527_v22 }
 0x24f   :  { %903 = vmatpush.bf16.msrb.mxu0 %v1478_v6  ;;  %916 = vmatpush.bf16.msrb.mxu1 %v1633_v54 }
 0x252   :  { %843 = vmatpush.bf16.msrb.mxu3 %v1550_v29 }
 0x253   :  { %904 = vmatpush.bf16.msrb.mxu0 %v1498_v12  ;;  %917 = vmatpush.bf16.msrb.mxu1 %v1661_v0 }
 0x256   :  { %844 = vmatpush.bf16.msrb.mxu3 %v1570_v35 }
 0x257   :  { %905 = vmatpush.bf16.msrb.mxu0 %v1518_v19  ;;  %918 = vmatpush.bf16.msrb.mxu1 %v1684_v8 }
 0x25a   :  { %845 = vmatpush.bf16.msrb.mxu3 %v1593_v42 }
 0x25b   :  { %906 = vmatpush.bf16.msrb.mxu0 %v1536_v25  ;;  %919 = vmatpush.bf16.msrb.mxu1 %v1699_v11 }
 0x25e   :  { %846 = vmatpush.bf16.msrb.mxu3 %v1621_v51 }
 0x25f   :  { %907 = vmatpush.bf16.msrb.mxu0 %v1561_v32  ;;  %920 = vmatpush.bf16.msrb.mxu1 %v1718_v17 }
 0x262   :  { %847 = vmatpush.bf16.msrb.mxu3 %v1649_v61 }
 0x263   :  { %908 = vmatpush.bf16.msrb.mxu0 %v1579_v38  ;;  %921 = vmatpush.bf16.msrb.mxu1 %v1731_v21 }
 0x266   :  { %848 = vmatpush.bf16.msrb.mxu3 %v1672_v5 }
 0x267   :  { %909 = vmatpush.bf16.msrb.mxu0 %v1604_v45  ;;  %922 = vmatpush.bf16.msrb.mxu1 %v1750_v27 }
 0x2c6   :  { %v663_v53 = vpop.f32.mrf.mxu0 }
 0x2c7   :  { %v681_v7 = vadd.f32 %v663_v53, %v161_v1  ;;  %v676_v62 = vpop.f32.mrf.mxu1 }
 0x2c8   :  { %v720_v28 = vadd.f32 %v1848_v18, %v676_v62 }
 0x2c9   :  { %v1285_v56 = vmul.f32 -1.442695, %v681_v7  ;;  %v202_v7 = vadd.f32 %v1888_v34, %v1851_v33 }
 0x2cb   :  { %1354 = vpow2.f32 %v1285_v56 }
 0x2cc   :  { %v650_v9 = vpop.f32.mrf.mxu3 }
 0x2cd   :  { %v680_v16 = vadd.f32 %v650_v9, %v1832_v41 }
 0x2ce   :  { %v665_v24 = vpop.f32.mrf.mxu0 }
 0x2cf   :  { %v1284_v48 = vmul.f32 -1.442695, %v680_v16  ;;  %v678_v49 = vpop.f32.mrf.mxu1 }
 0x2d1   :  { %1356 = vpow2.f32 %v1284_v48  ;;  %v1355_v20 = vpop.eup %1354 }
 0x2d2   :  { %v689_v4 = vadd.f32 1.0, %v1355_v20 }
 0x2d4   :  { %v652_v58 = vpop.f32.mrf.mxu3  ;;  %v716_v48 = vand.u32 2147483648, %v689_v4  ;;  %vm710_vm15 = vweird.f32 %v689_v4  ;;  %v714_v49 = vand.u32 2147483647, %v689_v4 }
 0x2d6   :  { %vm715_vm1 = vcmp.eq.f32.partialorder %v714_v49, 8.507059e+37 }
 0x2d7   :  { %v1357_v31 = vpop.eup %1356 }
 0x2d8   :  { %v688_v10 = vadd.f32 1.0, %v1357_v31  ;;  %v717_v31 = vor.u32 1.1754944e-38, %v716_v48 }
 0x2da   :  { %1358 = vrcp.f32 %v688_v10  ;;  %v701_v55 = vand.u32 2147483648, %v688_v10  ;;  %v699_v41 = vand.u32 2147483647, %v688_v10  ;;  %vm695_vm11 = vweird.f32 %v688_v10 }
 0x2db   :  { %1360 = vrcp.f32 %v689_v4 }
 0x2dc   :  { %v702_v39 = vor.u32 1.1754944e-38, %v701_v55  ;;  %vm700_vm13 = vcmp.eq.f32.partialorder %v699_v41, 8.507059e+37 }
 0x2e0   :  { %v1359_v30 = vpop.eup %1358 }
 0x2e1   :  { %v1361_v13 = vpop.eup %1360  ;;  %v691_v14 = vmul.f32 %v1359_v30, %v688_v10  ;;  %vm696_vm10 = vweird.f32 %v1359_v30 }
 0x2e2   :  { %v706_v23 = vmul.f32 %v1361_v13, %v689_v4  ;;  %vm697_vm12 = vmor %vm695_vm11, %vm696_vm10  ;;  %vm711_vm14 = vweird.f32 %v1361_v13 }
 0x2e3   :  { %v692_v36 = vsub.f32 1.0, %v691_v14  ;;  %vm712_vm0 = vmor %vm710_vm15, %vm711_vm14 }
 0x2e4   :  { %v707_v2 = vsub.f32 1.0, %v706_v23 }
 0x2e5   :  { %v693_v26 = vmul.f32 %v1359_v30, %v692_v36 }
 0x2e6   :  { %v708_v9 = vmul.f32 %v1361_v13, %v707_v2 }
 0x2e7   :  { %v694_v59 = vadd.f32 %v1359_v30, %v693_v26 }
 0x2e8   :  { %v709_v24 = vadd.f32 %v1361_v13, %v708_v9 }
 0x2e9   :  { %v698_v1 = vsel %vm697_vm12, %v1359_v30, %v694_v59 }
 0x2ea   :  { %v703_v53 = vsel %vm700_vm13, %v702_v39, %v698_v1  ;;  %v713_v20 = vsel %vm712_vm0, %v1361_v13, %v709_v24 }
 0x2eb   :  { %v721_v56 = vmul.f32 %v720_v28, %v703_v53  ;;  %v718_v10 = vsel %vm715_vm1, %v717_v31, %v713_v20  ;;  %v205_v28 = vadd.f32 %v1892_v40, %v1851_v33 }
 0x2ed   :  { %v722_v16 = vadd.f32 %v721_v56, %v202_v7 }
 0x2ef   :  { %1362 = vtanh.f32 %v722_v16 }
 0x2f5   :  { %v1363_v58 = vpop.eup %1362 }
 0x2f6   :  { %v724_v62 = vsub.f32 %v1946_v52, %v1363_v58 }
 0x2f8   :  { %v725_v30 = vmul.f32 %v724_v62, %v718_v10 }
 0x2fa   :  { %v1981_v14 = vadd.f32 %v1363_v58, %v725_v30 }
 0x2fc   :  { %v727_v34 = vpack.c.bf16 %v1981_v14, %v1981_v14 }
 0x2fe   :  { %736 = vmatmul.bf16.vlgmr.msrb.gmra.mxu2 %v727_v34  ;;  %749 = vmatmul.bf16.vlgmr.msra.gmra.mxu3 %v727_v34 }
 0x2ff   :  { %762 = vmatmul.bf16.vlgmr.msra.gmra.mxu0 %v727_v34  ;;  %928 = vmatpush.bf16.msrb.mxu2 %v1506_v15 }
 0x300   :  { %989 = vmatpush.bf16.msra.mxu3 %v1469_v3  ;;  %1002 = vmatpush.bf16.msra.mxu0 %v1606_v46 }
 0x303   :  { %929 = vmatpush.bf16.msrb.mxu2 %v1527_v22 }
 0x304   :  { %990 = vmatpush.bf16.msra.mxu3 %v1478_v6  ;;  %1003 = vmatpush.bf16.msra.mxu0 %v1633_v54  ;;  %v164_v6 = vadd.f32 %v1890_v37, %v1840_v63 }
 0x307   :  { %930 = vmatpush.bf16.msrb.mxu2 %v1550_v29 }
 0x308   :  { %991 = vmatpush.bf16.msra.mxu3 %v1498_v12  ;;  %1004 = vmatpush.bf16.msra.mxu0 %v1661_v0 }
 0x30b   :  { %931 = vmatpush.bf16.msrb.mxu2 %v1570_v35 }
 0x30c   :  { %992 = vmatpush.bf16.msra.mxu3 %v1518_v19  ;;  %1005 = vmatpush.bf16.msra.mxu0 %v1684_v8 }
 0x30f   :  { %932 = vmatpush.bf16.msrb.mxu2 %v1593_v42 }
 0x310   :  { %993 = vmatpush.bf16.msra.mxu3 %v1536_v25  ;;  %1006 = vmatpush.bf16.msra.mxu0 %v1699_v11 }
 0x313   :  { %933 = vmatpush.bf16.msrb.mxu2 %v1621_v51 }
 0x314   :  { %994 = vmatpush.bf16.msra.mxu3 %v1561_v32  ;;  %1007 = vmatpush.bf16.msra.mxu0 %v1718_v17 }
 0x317   :  { %934 = vmatpush.bf16.msrb.mxu2 %v1649_v61 }
 0x318   :  { %995 = vmatpush.bf16.msra.mxu3 %v1579_v38  ;;  %1008 = vmatpush.bf16.msra.mxu0 %v1731_v21 }
 0x31b   :  { %935 = vmatpush.bf16.msrb.mxu2 %v1672_v5 }
 0x31c   :  { %996 = vmatpush.bf16.msra.mxu3 %v1604_v45  ;;  %1009 = vmatpush.bf16.msra.mxu0 %v1750_v27 }
 0x37c   :  { %v763_v3 = vpop.f32.mrf.mxu0 }
 0x37d   :  { %v807_v59 = vadd.f32 %v1848_v18, %v763_v3 }
 0x381   :  { %v737_v12 = vpop.f32.mrf.mxu2  ;;  %v750_v19 = vpop.f32.mrf.mxu3 }
 0x382   :  { %v767_v25 = vadd.f32 %v737_v12, %v1834_v50  ;;  %v768_v32 = vadd.f32 %v750_v19, %v164_v6 }
 0x384   :  { %v1286_v46 = vmul.f32 -1.442695, %v767_v25  ;;  %v1287_v54 = vmul.f32 -1.442695, %v768_v32  ;;  %v765_v38 = vpop.f32.mrf.mxu0 }
 0x386   :  { %1364 = vpow2.f32 %v1286_v46 }
 0x387   :  { %1366 = vpow2.f32 %v1287_v54 }
 0x389   :  { %v739_v0 = vpop.f32.mrf.mxu2  ;;  %v752_v8 = vpop.f32.mrf.mxu3 }
 0x38c   :  { %v1365_v11 = vpop.eup %1364 }
 0x38d   :  { %v1367_v45 = vpop.eup %1366  ;;  %v775_v17 = vadd.f32 1.0, %v1365_v11 }
 0x38e   :  { %v776_v21 = vadd.f32 1.0, %v1367_v45 }
 0x38f   :  { %1368 = vrcp.f32 %v775_v17  ;;  %v788_v13 = vand.u32 2147483648, %v775_v17  ;;  %v786_v23 = vand.u32 2147483647, %v775_v17  ;;  %vm782_vm3 = vweird.f32 %v775_v17 }
 0x390   :  { %1370 = vrcp.f32 %v776_v21  ;;  %v803_v9 = vand.u32 2147483648, %v776_v21  ;;  %vm797_vm7 = vweird.f32 %v776_v21  ;;  %v801_v16 = vand.u32 2147483647, %v776_v21 }
 0x391   :  { %v789_v26 = vor.u32 1.1754944e-38, %v788_v13  ;;  %vm787_vm5 = vcmp.eq.f32.partialorder %v786_v23, 8.507059e+37 }
 0x392   :  { %v804_v49 = vor.u32 1.1754944e-38, %v803_v9  ;;  %vm802_vm9 = vcmp.eq.f32.partialorder %v801_v16, 8.507059e+37 }
 0x395   :  { %v1369_v27 = vpop.eup %1368 }
 0x396   :  { %v1371_v37 = vpop.eup %1370  ;;  %v778_v52 = vmul.f32 %v1369_v27, %v775_v17  ;;  %vm783_vm2 = vweird.f32 %v1369_v27 }
 0x397   :  { %v793_v50 = vmul.f32 %v1371_v37, %v776_v21  ;;  %vm784_vm4 = vmor %vm782_vm3, %vm783_vm2  ;;  %vm798_vm6 = vweird.f32 %v1371_v37 }
 0x398   :  { %v779_v4 = vsub.f32 1.0, %v778_v52  ;;  %vm799_vm8 = vmor %vm797_vm7, %vm798_vm6 }
 0x399   :  { %v794_v41 = vsub.f32 1.0, %v793_v50 }
 0x39a   :  { %v780_v36 = vmul.f32 %v1369_v27, %v779_v4 }
 0x39b   :  { %v795_v53 = vmul.f32 %v1371_v37, %v794_v41 }
 0x39c   :  { %v781_v55 = vadd.f32 %v1369_v27, %v780_v36 }
 0x39d   :  { %v796_v56 = vadd.f32 %v1371_v37, %v795_v53 }
 0x39e   :  { %v785_v2 = vsel %vm784_vm4, %v1369_v27, %v781_v55  ;;  %v208_v27 = vadd.f32 %v1896_v44, %v1851_v33 }
 0x39f   :  { %v790_v39 = vsel %vm787_vm5, %v789_v26, %v785_v2  ;;  %v800_v24 = vsel %vm799_vm8, %v1371_v37, %v796_v56 }
 0x3a0   :  { %v808_v1 = vmul.f32 %v807_v59, %v790_v39  ;;  %v805_v58 = vsel %vm802_vm9, %v804_v49, %v800_v24 }
 0x3a2   :  { %v809_v7 = vadd.f32 %v808_v1, %v205_v28  ;;  %v170_v28 = vadd.f32 %v1898_v47, %v1840_v63 }
 0x3a4   :  { %1372 = vtanh.f32 %v809_v7 }
 0x3aa   :  { %v1373_v48 = vpop.eup %1372 }
 0x3ab   :  { %v811_v20 = vsub.f32 %v1981_v14, %v1373_v48 }
 0x3ad   :  { %v812_v31 = vmul.f32 %v811_v20, %v805_v58 }
 0x3af   :  { %v2016_v62 = vadd.f32 %v1373_v48, %v812_v31 }
 0x3b1   :  { %v814_v40 = vpack.c.bf16 %v2016_v62, %v2016_v62 }
 0x3b3   :  { %823 = vmatmul.bf16.vlgmr.msra.gmra.mxu1 %v814_v40  ;;  %836 = vmatmul.bf16.vlgmr.msra.gmra.mxu2 %v814_v40 }
 0x3b4   :  { %849 = vmatmul.bf16.vlgmr.msrb.gmra.mxu3 %v814_v40  ;;  %1015 = vmatpush.bf16.msra.mxu1 %v1506_v15  ;;  %v167_v15 = vadd.f32 %v1894_v43, %v1840_v63 }
 0x3b8   :  { %1016 = vmatpush.bf16.msra.mxu1 %v1527_v22 }
 0x3bc   :  { %1017 = vmatpush.bf16.msra.mxu1 %v1550_v29 }
 0x3c0   :  { %1018 = vmatpush.bf16.msra.mxu1 %v1570_v35 }
 0x3c4   :  { %1019 = vmatpush.bf16.msra.mxu1 %v1593_v42 }
 0x3c8   :  { %1020 = vmatpush.bf16.msra.mxu1 %v1621_v51 }
 0x3cc   :  { %1021 = vmatpush.bf16.msra.mxu1 %v1649_v61 }
 0x3d0   :  { %1022 = vmatpush.bf16.msra.mxu1 %v1672_v5 }
 0x430   :  { %v824_v10 = vpop.f32.mrf.mxu1 }
 0x431   :  { %v854_v30 = vadd.f32 %v824_v10, %v1836_v57 }
 0x433   :  { %v1288_v14 = vmul.f32 -1.442695, %v854_v30 }
 0x435   :  { %1374 = vpow2.f32 %v1288_v14 }
 0x436   :  { %v837_v22 = vpop.f32.mrf.mxu2 }
 0x437   :  { %v855_v29 = vadd.f32 %v837_v22, %v167_v15  ;;  %v850_v34 = vpop.f32.mrf.mxu3 }
 0x438   :  { %v826_v35 = vpop.f32.mrf.mxu1  ;;  %v894_v17 = vadd.f32 %v1848_v18, %v850_v34 }
 0x439   :  { %v1289_v3 = vmul.f32 -1.442695, %v855_v29 }
 0x43b   :  { %v1375_v42 = vpop.eup %1374  ;;  %1376 = vpow2.f32 %v1289_v3 }
 0x43c   :  { %v862_v51 = vadd.f32 1.0, %v1375_v42 }
 0x43e   :  { %1378 = vrcp.f32 %v862_v51  ;;  %v839_v61 = vpop.f32.mrf.mxu2  ;;  %v875_v32 = vand.u32 2147483648, %v862_v51  ;;  %v873_v46 = vand.u32 2147483647, %v862_v51  ;;  %vm869_vm11 = vweird.f32 %v862_v51 }
 0x43f   :  { %v852_v6 = vpop.f32.mrf.mxu3 }
 0x440   :  { %v876_v8 = vor.u32 1.1754944e-38, %v875_v32  ;;  %vm874_vm13 = vcmp.eq.f32.partialorder %v873_v46, 8.507059e+37  ;;  %v2128_v6 = vld [vmem:[#allocation4_spill] sm:$0xff] }
 0x441   :  { %v1377_v5 = vpop.eup %1376 }
 0x442   :  { %v863_v12 = vadd.f32 1.0, %v1377_v5  ;;  %v211_v5 = vadd.f32 %v2128_v6, %v1851_v33 }
 0x444   :  { %v1379_v19 = vpop.eup %1378  ;;  %1380 = vrcp.f32 %v863_v12  ;;  %v890_v50 = vand.u32 2147483648, %v863_v12  ;;  %vm884_vm15 = vweird.f32 %v863_v12  ;;  %v888_v36 = vand.u32 2147483647, %v863_v12 }
 0x445   :  { %v865_v57 = vmul.f32 %v1379_v19, %v862_v51  ;;  %vm870_vm10 = vweird.f32 %v1379_v19 }
 0x446   :  { %vm871_vm12 = vmor %vm869_vm11, %vm870_vm10  ;;  %v891_v26 = vor.u32 1.1754944e-38, %v890_v50  ;;  %vm889_vm1 = vcmp.eq.f32.partialorder %v888_v36, 8.507059e+37 }
 0x447   :  { %v866_v25 = vsub.f32 1.0, %v865_v57 }
 0x449   :  { %v867_v43 = vmul.f32 %v1379_v19, %v866_v25 }
 0x44a   :  { %v1381_v54 = vpop.eup %1380 }
 0x44b   :  { %v880_v38 = vmul.f32 %v1381_v54, %v863_v12  ;;  %v868_v0 = vadd.f32 %v1379_v19, %v867_v43  ;;  %vm885_vm14 = vweird.f32 %v1381_v54 }
 0x44c   :  { %vm886_vm0 = vmor %vm884_vm15, %vm885_vm14 }
 0x44d   :  { %v881_v11 = vsub.f32 1.0, %v880_v38  ;;  %v872_v45 = vsel %vm871_vm12, %v1379_v19, %v868_v0 }
 0x44e   :  { %v877_v21 = vsel %vm874_vm13, %v876_v8, %v872_v45 }
 0x44f   :  { %v895_v37 = vmul.f32 %v894_v17, %v877_v21  ;;  %v882_v52 = vmul.f32 %v1381_v54, %v881_v11  ;;  %v1090_v17 = vld [vmem:[%s2120_s5 + $0x78] sm:$0xff]  ;;  %v1089_v21 = vld [vmem:[%s2120_s5 + $0x70] sm:$0xff] }
 0x450   :  { %1095 = vmatpush.msra.mxu2 %v1090_v17 }
 0x451   :  { %v896_v4 = vadd.f32 %v895_v37, %v208_v27  ;;  %v883_v13 = vadd.f32 %v1381_v54, %v882_v52  ;;  %v1088_v27 = vld [vmem:[%s2120_s5 + $0x68] sm:$0xff]  ;;  %v1087_v37 = vld [vmem:[%s2120_s5 + $0x60] sm:$0xff] }
 0x452   :  { %1096 = vmatpush.msra.mxu2 %v1089_v21  ;;  %v2129_v52 = vld [vmem:[#allocation5_spill] sm:$0xff] }
 0x453   :  { %1382 = vtanh.f32 %v896_v4  ;;  %v887_v23 = vsel %vm886_vm0, %v1381_v54, %v883_v13  ;;  %v173_v4 = vadd.f32 %v2129_v52, %v1840_v63  ;;  %v1086_v13 = vld [vmem:[%s2120_s5 + $0x58] sm:$0xff]  ;;  %v1083_v63 = vld [vmem:[%s2120_s5 + $0x40] sm:$0xff] }
 0x454   :  { %v892_v59 = vsel %vm889_vm1, %v891_v26, %v887_v23  ;;  %1097 = vmatpush.msra.mxu2 %v1088_v27  ;;  %v1084_v26 = vld [vmem:[%s2120_s5 + $0x48] sm:$0xff]  ;;  %v1321_v21 = vld [vmem:[%s2119_s6] ss:$0 sm:$0xff] }
 0x455   :  { %v1322_v52 = vld [vmem:[%s2121_s7] ss:$0 sm:$0xff] }
 0x456   :  { %1098 = vmatpush.msra.mxu2 %v1087_v37 }
 0x458   :  { %1099 = vmatpush.msra.mxu2 %v1086_v13 }
 0x459   :  { %v1383_v55 = vpop.eup %1382 }
 0x45a   :  { %v898_v41 = vsub.f32 %v2016_v62, %v1383_v55 }
 0x45c   :  { %v899_v2 = vmul.f32 %v898_v41, %v892_v59  ;;  %v1082_v59 = vld [vmem:[%s2120_s5 + $0x38] sm:$0xff] }
 0x45e   :  { %v900_v39 = vadd.f32 %v1383_v55, %v899_v2  ;;  %v1085_v55 = vld [vmem:[%s2120_s5 + $0x50] sm:$0xff] }
 0x45f   :  { %1100 = vmatpush.msra.mxu2 %v1085_v55 }
 0x460   :  { %v901_v44 = vpack.c.bf16 %v900_v39, %v900_v39 }
 0x461   :  { %1101 = vmatpush.msra.mxu2 %v1084_v26 }
 0x462   :  { %910 = vmatmul.bf16.vlgmr.msrb.gmra.mxu0 %v901_v44  ;;  %923 = vmatmul.bf16.vlgmr.msrb.gmra.mxu1 %v901_v44 }
 0x463   :  { %936 = vmatmul.bf16.vlgmr.msrb.gmra.mxu2 %v901_v44 }
 0x464   :  { %1102 = vmatpush.msra.mxu2 %v1083_v63 }
 0x466   :  { %1103 = vmatpush.msra.mxu2 %v1082_v59 }
 0x4df   :  { %v911_v1 = vpop.f32.mrf.mxu0  ;;  %v924_v53 = vpop.f32.mrf.mxu1 }
 0x4e0   :  { %v941_v7 = vadd.f32 %v911_v1, %v1838_v60  ;;  %v942_v56 = vadd.f32 %v924_v53, %v170_v28  ;;  %v1081_v28 = vld [vmem:[%s2120_s5 + $0x30] sm:$0xff] }
 0x4e1   :  { %1104 = vmatpush.msra.mxu2 %v1081_v28 }
 0x4e2   :  { %v1290_v9 = vmul.f32 -1.442695, %v941_v7  ;;  %v1291_v16 = vmul.f32 -1.442695, %v942_v56  ;;  %v1080_v56 = vld [vmem:[%s2120_s5 + $0x28] sm:$0xff] }
 0x4e3   :  { %1105 = vmatpush.msra.mxu2 %v1080_v56 }
 0x4e4   :  { %1384 = vpow2.f32 %v1290_v9  ;;  %v1079_v9 = vld [vmem:[%s2120_s5 + $0x20] sm:$0xff] }
 0x4e5   :  { %1386 = vpow2.f32 %v1291_v16  ;;  %v1078_v16 = vld [vmem:[%s2120_s5 + $0x18] sm:$0xff]  ;;  %1106 = vmatpush.msra.mxu2 %v1079_v9 }
 0x4e6   :  { %v937_v24 = vpop.f32.mrf.mxu2 }
 0x4e7   :  { %v913_v48 = vpop.f32.mrf.mxu0  ;;  %v926_v49 = vpop.f32.mrf.mxu1  ;;  %v981_v51 = vadd.f32 %v1848_v18, %v937_v24  ;;  %1107 = vmatpush.msra.mxu2 %v1078_v16 }
 0x4e8   :  { %v1077_v49 = vld [vmem:[%s2120_s5 + $0x10] sm:$0xff] }
 0x4e9   :  { %1108 = vmatpush.msra.mxu2 %v1077_v49 }
 0x4ea   :  { %v1385_v20 = vpop.eup %1384 }
 0x4eb   :  { %v1387_v58 = vpop.eup %1386  ;;  %v949_v31 = vadd.f32 1.0, %v1385_v20 }
 0x4ec   :  { %v950_v62 = vadd.f32 1.0, %v1387_v58 }
 0x4ed   :  { %1388 = vrcp.f32 %v949_v31  ;;  %v962_v15 = vand.u32 2147483648, %v949_v31  ;;  %v960_v29 = vand.u32 2147483647, %v949_v31  ;;  %vm956_vm3 = vweird.f32 %v949_v31 }
 0x4ee   :  { %1390 = vrcp.f32 %v950_v62  ;;  %v939_v40 = vpop.f32.mrf.mxu2  ;;  %v977_v32 = vand.u32 2147483648, %v950_v62  ;;  %vm971_vm7 = vweird.f32 %v950_v62  ;;  %v975_v43 = vand.u32 2147483647, %v950_v62 }
 0x4ef   :  { %v963_v3 = vor.u32 1.1754944e-38, %v962_v15  ;;  %vm961_vm5 = vcmp.eq.f32.partialorder %v960_v29, 8.507059e+37  ;;  %v1075_v40 = vld [vmem:[%s2120_s5] sm:$0xff] }
 0x4f0   :  { %v978_v38 = vor.u32 1.1754944e-38, %v977_v32  ;;  %vm976_vm9 = vcmp.eq.f32.partialorder %v975_v43, 8.507059e+37 }
 0x4f3   :  { %v1389_v47 = vpop.eup %1388 }
 0x4f4   :  { %v1391_v10 = vpop.eup %1390  ;;  %v952_v30 = vmul.f32 %v1389_v47, %v949_v31  ;;  %vm957_vm2 = vweird.f32 %v1389_v47  ;;  %v1076_v31 = vld [vmem:[%s2120_s5 + $0x8] sm:$0xff] }
 0x4f5   :  { %v967_v60 = vmul.f32 %v1391_v10, %v950_v62  ;;  %vm958_vm4 = vmor %vm956_vm3, %vm957_vm2  ;;  %vm972_vm6 = vweird.f32 %v1391_v10  ;;  %1109 = vmatpush.msra.mxu2 %v1076_v31  ;;  %vm1121_vm2 = vcmask 261120  }
 0x4f6   :  { %v953_v14 = vsub.f32 1.0, %v952_v30  ;;  %vm973_vm8 = vmor %vm971_vm7, %vm972_vm6  ;;  %vm1149_vm6 = vcmask 7168  }
 0x4f7   :  { %v968_v35 = vsub.f32 1.0, %v967_v60  ;;  %1110 = vmatpush.msra.mxu2 %v1075_v40 }
 0x4f8   :  { %v954_v22 = vmul.f32 %v1389_v47, %v953_v14 }
 0x4f9   :  { %v969_v19 = vmul.f32 %v1391_v10, %v968_v35 }
 0x4fa   :  { %v955_v34 = vadd.f32 %v1389_v47, %v954_v22 }
 0x4fb   :  { %v970_v25 = vadd.f32 %v1391_v10, %v969_v19 }
 0x4fc   :  { %v959_v42 = vsel %vm958_vm4, %v1389_v47, %v955_v34 }
 0x4fd   :  { %v964_v61 = vsel %vm961_vm5, %v963_v3, %v959_v42  ;;  %v974_v46 = vsel %vm973_vm8, %v1391_v10, %v970_v25  ;;  %v1408_v42 = vld [vmem:[%s2117_s4] ss:$0 sm:$0xff] }
 0x4fe   :  { %v982_v12 = vmul.f32 %v981_v51, %v964_v61  ;;  %v979_v18 = vsel %vm976_vm9, %v978_v38, %v974_v46 }
 0x500   :  { %v983_v57 = vadd.f32 %v982_v12, %v211_v5  ;;  %v2131_v5 = vld [vmem:[#allocation6_spill] sm:$0xff] }
 0x501   :  { %v214_v12 = vadd.f32 %v2131_v5, %v1851_v33  ;;  %v14_v33 = vstv %s2122_s8 }
 0x502   :  { %1392 = vtanh.f32 %v983_v57  ;;  %15 = vst [vmem:[#allocation2] sm:$0x1] %v14_v33 }
 0x508   :  { %v1393_v54 = vpop.eup %1392 }
 0x509   :  { %v985_v0 = vsub.f32 %v900_v39, %v1393_v54  ;;  %v2130_v39 = vld [vmem:[#allocation3_spill] sm:$0xff] }
 0x50b   :  { %v986_v8 = vmul.f32 %v985_v0, %v979_v18 }
 0x50d   :  { %v2041_v11 = vadd.f32 %v1393_v54, %v986_v8 }
 0x50f   :  { %v988_v45 = vpack.c.bf16 %v2041_v11, %v2041_v11 }
 0x511   :  { %997 = vmatmul.bf16.vlgmr.msra.gmra.mxu3 %v988_v45  ;;  %1010 = vmatmul.bf16.vlgmr.msra.gmra.mxu0 %v988_v45 }
 0x512   :  { %1023 = vmatmul.bf16.vlgmr.msra.gmra.mxu1 %v988_v45 }
 0x58e   :  { %v1011_v50 = vpop.f32.mrf.mxu0 }
 0x58f   :  { %v1029_v36 = vadd.f32 %v1011_v50, %v173_v4  ;;  %v1024_v23 = vpop.f32.mrf.mxu1  ;;  %v1323_v50 = vld [vmem:[#allocation2] ss:$0 sm:$0xff] }
 0x590   :  { %v1068_v51 = vadd.f32 %v1408_v42, %v1024_v23 }
 0x591   :  { %v1293_v41 = vmul.f32 -1.442695, %v1029_v36 }
 0x593   :  { %1394 = vpow2.f32 %v1293_v41 }
 0x594   :  { %v998_v2 = vpop.f32.mrf.mxu3 }
 0x595   :  { %v1028_v44 = vadd.f32 %v998_v2, %v2130_v39 }
 0x596   :  { %v1013_v1 = vpop.f32.mrf.mxu0 }
 0x597   :  { %v1292_v53 = vmul.f32 -1.442695, %v1028_v44  ;;  %v1026_v7 = vpop.f32.mrf.mxu1 }
 0x599   :  { %1396 = vpow2.f32 %v1292_v53  ;;  %v1395_v24 = vpop.eup %1394 }
 0x59a   :  { %v1037_v58 = vadd.f32 1.0, %v1395_v24 }
 0x59c   :  { %v1000_v48 = vpop.f32.mrf.mxu3  ;;  %v1064_v43 = vand.u32 2147483648, %v1037_v58  ;;  %vm1058_vm15 = vweird.f32 %v1037_v58  ;;  %v1062_v46 = vand.u32 2147483647, %v1037_v58 }
 0x59e   :  { %v1065_v0 = vor.u32 1.1754944e-38, %v1064_v43  ;;  %vm1063_vm1 = vcmp.eq.f32.partialorder %v1062_v46, 8.507059e+37 }
 0x59f   :  { %v1397_v20 = vpop.eup %1396 }
 0x5a0   :  { %v1036_v62 = vadd.f32 1.0, %v1397_v20 }
 0x5a2   :  { %1398 = vrcp.f32 %v1036_v62  ;;  %v1049_v15 = vand.u32 2147483648, %v1036_v62  ;;  %v1047_v29 = vand.u32 2147483647, %v1036_v62  ;;  %vm1043_vm11 = vweird.f32 %v1036_v62 }
 0x5a3   :  { %1400 = vrcp.f32 %v1037_v58 }
 0x5a4   :  { %v1050_v3 = vor.u32 1.1754944e-38, %v1049_v15  ;;  %vm1048_vm13 = vcmp.eq.f32.partialorder %v1047_v29, 8.507059e+37 }
 0x5a8   :  { %v1399_v47 = vpop.eup %1398 }
 0x5a9   :  { %v1401_v10 = vpop.eup %1400  ;;  %v1039_v30 = vmul.f32 %v1399_v47, %v1036_v62  ;;  %vm1044_vm10 = vweird.f32 %v1399_v47 }
 0x5aa   :  { %v1054_v60 = vmul.f32 %v1401_v10, %v1037_v58  ;;  %vm1045_vm12 = vmor %vm1043_vm11, %vm1044_vm10  ;;  %vm1059_vm14 = vweird.f32 %v1401_v10 }
 0x5ab   :  { %v1040_v14 = vsub.f32 1.0, %v1039_v30  ;;  %vm1060_vm0 = vmor %vm1058_vm15, %vm1059_vm14 }
 0x5ac   :  { %v1055_v35 = vsub.f32 1.0, %v1054_v60 }
 0x5ad   :  { %v1041_v22 = vmul.f32 %v1399_v47, %v1040_v14 }
 0x5ae   :  { %v1056_v57 = vmul.f32 %v1401_v10, %v1055_v35 }
 0x5af   :  { %v1042_v34 = vadd.f32 %v1399_v47, %v1041_v22 }
 0x5b0   :  { %v1057_v32 = vadd.f32 %v1401_v10, %v1056_v57 }
 0x5b1   :  { %v1046_v61 = vsel %vm1045_vm12, %v1399_v47, %v1042_v34 }
 0x5b2   :  { %v1051_v6 = vsel %vm1048_vm13, %v1050_v3, %v1046_v61  ;;  %v1061_v54 = vsel %vm1060_vm0, %v1401_v10, %v1057_v32 }
 0x5b3   :  { %v1069_v19 = vmul.f32 %v1068_v51, %v1051_v6  ;;  %v1066_v8 = vsel %vm1063_vm1, %v1065_v0, %v1061_v54 }
 0x5b5   :  { %v1070_v25 = vadd.f32 %v1069_v19, %v214_v12 }
 0x5b7   :  { %1402 = vtanh.f32 %v1070_v25 }
 0x5bd   :  { %v1403_v38 = vpop.eup %1402 }
 0x5be   :  { %v1072_v18 = vsub.f32 %v2041_v11, %v1403_v38 }
 0x5c0   :  { %v1073_v45 = vmul.f32 %v1072_v18, %v1066_v8 }
 0x5c2   :  { %v1074_v17 = vadd.f32 %v1403_v38, %v1073_v45 }
 0x5c4   :  { %1111 = vmatmul.f32.vlgmr.msra.gmra.mxu2 %v1074_v17 }
 0x647   :  { %v1112_v27 = vpop.f32.mrf.mxu2 }
 0x648   :  { %v1113_v37 = vadd.f32 %v1321_v21, %v1112_v27 }
 0x64a   :  { %v1115_v11 = vmax.f32 %v1113_v37, 0.0 }
 0x64c   :  { %v1120_v4 = vmul.f32 %v1322_v52, %v1115_v11 }
 0x64e   :  { %v1122_v13 = vsel %vm1121_vm2, %v1120_v4, 0.0 }
 0x64f   :  { %1123 = vadd.xlane.f32.xlu0 %v1122_v13 }
 0x6c2   :  { %v1124_v36 = vpop.xlane.xlu0 %1123 }
 0x6c3   :  { %v1129_v23 = vadd.f32 %v1323_v50, %v1124_v36 }
 0x6c5   :  { %v1294_v55 = vmul.f32 -1.442695, %v1129_v23 }
 0x6c7   :  { %1404 = vpow2.f32 %v1294_v55 }
 0x6cd   :  { %v1405_v26 = vpop.eup %1404 }
 0x6ce   :  { %v1133_v63 = vadd.f32 1.0, %v1405_v26 }
 0x6d0   :  { %1406 = vrcp.f32 %v1133_v63  ;;  %v1145_v39 = vand.u32 2147483648, %v1133_v63  ;;  %v1143_v28 = vand.u32 2147483647, %v1133_v63  ;;  %vm1139_vm4 = vweird.f32 %v1133_v63 }
 0x6d2   :  { %v1146_v53 = vor.u32 1.1754944e-38, %v1145_v39  ;;  %vm1144_vm7 = vcmp.eq.f32.partialorder %v1143_v28, 8.507059e+37 }
 0x6d6   :  { %v1407_v41 = vpop.eup %1406 }
 0x6d7   :  { %v1135_v59 = vmul.f32 %v1407_v41, %v1133_v63  ;;  %vm1140_vm3 = vweird.f32 %v1407_v41 }
 0x6d8   :  { %vm1141_vm5 = vmor %vm1139_vm4, %vm1140_vm3 }
 0x6d9   :  { %v1136_v2 = vsub.f32 1.0, %v1135_v59 }
 0x6db   :  { %v1137_v44 = vmul.f32 %v1407_v41, %v1136_v2 }
 0x6dd   :  { %v1138_v1 = vadd.f32 %v1407_v41, %v1137_v44 }
 0x6df   :  { %v1142_v7 = vsel %vm1141_vm5, %v1407_v41, %v1138_v1 }
 0x6e0   :  { %v1147_v56 = vsel %vm1144_vm7, %v1146_v53, %v1142_v7 }
 0x6e1   :  { %1150 = vst.msk [vmem:[%s2123_s9] sm:$0xff] %vm1149_vm6, %v1147_v56 }

</bundles_post_ra>
